<compile_context>
chip_gen: v5e
topology: v5e:2x2
jax: 0.10.0
libtpu: 0.0.40
codegen_flags: <defaults>
</compile_context>

<pallas_src>
import functools

import jax
import jax.numpy as jnp
from jax.experimental import pallas as pl
from jax.experimental.pallas import tpu as pltpu

SOFTMAX_TEMP = 0.5  # cfg.model.fc.softmax_temp
LANE = 128


def _round_up(x, m):
    return ((x + m - 1) // m) * m


def general_model_kernel(
    t_ref,                          # SMEM int32 [B]   (scalar prefetch: batch.T)
    x_ref, ahat_ref,                # [1, TT, D] (mxu dtype), [1, 1, Cp] f32
    w1_ref, b1_ref,                 # fer layer 1       [D, Hp], [1, Hp]
    w2s_ref, b2s_ref,               # fused [w2 | ws]   [Hp, Hp+Cp], [1, Hp+Cp]
    wcl_ref, bcl_ref,               # fused [wc | wl|0] [Hp, Cp+LANE], [1, Cp+LANE]
    slab_out, v_out,                # [1, TT, Wout],    [1, 1, Cp] f32 (resident acc)
    *, include_z, inv_temp,
):
    b = pl.program_id(0)
    t = pl.program_id(1)
    nt = pl.num_programs(1)

    Hp = w1_ref.shape[1]
    Cp = v_out.shape[-1]
    Lw = wcl_ref.shape[1] - Cp          # LANE-wide L block; lane 0 is the real head
    TT = x_ref.shape[1]

    # V accumulates in place in the resident output block (same block across t).
    @pl.when(t == 0)
    def _():
        v_out[...] = jnp.zeros_like(v_out)

    x = x_ref[0]                                                        # [TT, D]

    # ---- fer layer 1 ----
    z = jnp.maximum(
        jnp.dot(x, w1_ref[...], preferred_element_type=jnp.float32) + b1_ref[...],
        0.0,
    )                                                                   # [TT, Hp] (Z)
    off = 0
    if include_z:
        slab_out[0, :, 0:Hp] = z.astype(slab_out.dtype)                 # lane-aligned store
        off = Hp

    # ---- fused fer layer 2 + fs head (both consume Z): one MXU call ----
    zs = (
        jnp.dot(z.astype(x.dtype), w2s_ref[...], preferred_element_type=jnp.float32)
        + b2s_ref[...]
    )                                                                   # [TT, Hp+Cp]
    z_prime = jnp.maximum(zs[:, :Hp], 0.0)                              # [TT, Hp] (Z')
    s = zs[:, Hp:Hp + Cp]                                               # [TT, Cp] (S)
    slab_out[0, :, off:off + Cp] = s.astype(slab_out.dtype)

    # ---- fused fc + fl heads (both consume Z'): one MXU call ----
    acl = (
        jnp.dot(z_prime.astype(x.dtype), wcl_ref[...], preferred_element_type=jnp.float32)
        + bcl_ref[...]
    )                                                                   # [TT, Cp+LANE]

    # fc: temperature softmax over the (padded, -1e9 biased) class axis — f32
    a_logits = acl[:, :Cp] * inv_temp
    a_max = jnp.max(a_logits, axis=-1, keepdims=True)
    a_exp = jnp.exp(a_logits - a_max)
    a = a_exp * pl.reciprocal(jnp.sum(a_exp, axis=-1, keepdims=True), approx=True)
    slab_out[0, :, off + Cp:off + 2 * Cp] = a.astype(slab_out.dtype)

    # fl: per-frame length gate (lane 0 of the LANE-wide block is the real head)
    l_blk = jax.nn.sigmoid(acl[:, Cp:Cp + Lw])                          # [TT, LANE]
    l = l_blk[:, 0:1]                                                   # [TT, 1]

    # fu: Y = A * L
    y = a * l                                                           # [TT, Cp]
    slab_out[0, :, off + 2 * Cp:off + 3 * Cp] = y.astype(slab_out.dtype)
    slab_out[0, :, off + 3 * Cp:off + 3 * Cp + Lw] = l_blk.astype(slab_out.dtype)

    # ---- get_masks + sct: masked partial reduction into the resident V block ----
    t_len = t_ref[b]
    row = t * TT + jax.lax.broadcasted_iota(jnp.int32, (TT, 1), 0)
    valid = (row < t_len).astype(jnp.float32)                           # [TT, 1]
    v_out[0] = v_out[0] + jnp.sum((y * ahat_ref[0]) * s * valid, axis=0, keepdims=True)

    @pl.when(t == nt - 1)
    def _():
        inv_t = 1.0 / jnp.maximum(t_len, 1).astype(jnp.float32)         # guard T == 0
        v_out[0] = v_out[0] * inv_t


def general_model_forward(
    T_lens, X, A_hat, params, *,
    tt=None,
    mxu_dtype=jnp.bfloat16,     # bf16 matmuls (f32 accumulation) by default
    out_dtype=jnp.bfloat16,     # bf16 slab writeback by default; V stays f32
    include_Z=True,
):
    """X: [B, Tn, D] f32, A_hat: [B, 1, C] f32, T_lens: [B] int32.

    Pass mxu_dtype=out_dtype=jnp.float32 for bit-accurate parity testing.
    Note: with bf16 matmuls, the Z written out is the f32 ReLU of a bf16
    matmul while layer 2 consumes its bf16 round-trip (harmless mismatch).
    """
    B, Tn, D = X.shape
    H = params["w1"].shape[1]
    C = params["ws"].shape[1]
    f32 = jnp.float32

    Hp = _round_up(H, LANE)
    Cp = _round_up(C, LANE)
    Lw = LANE
    Wout = (Hp if include_Z else 0) + 3 * Cp + Lw

    # ---- generation-aware VMEM budget & time tile ----
    try:
        vmem_cap = int(pltpu.get_tpu_info().vmem_capacity_bytes)
    except Exception:
        vmem_cap = 128 * 1024 * 1024
    vmem_limit = int(min(max(vmem_cap // 2, 32 * 1024 * 1024), 96 * 1024 * 1024))

    in_item = jnp.dtype(mxu_dtype).itemsize
    out_item = jnp.dtype(out_dtype).itemsize
    weight_bytes = (D * Hp + Hp * (Hp + Cp) + Hp * (Cp + Lw)) * in_item

    if tt is None:
        # double-buffered streaming tiles + rough f32 live temps per frame
        per_row = (2 * D * in_item + 2 * Wout * out_item
                   + 4 * (3 * Hp + 6 * Cp + 2 * Lw))
        budget = max(int(0.5 * vmem_limit) - 2 * weight_bytes, 8 * per_row)
        tt = max(8, min(1024, budget // per_row))
        # prefer 256-multiples so MXU passes are full on v6e/v7x
        tt = (tt // 256) * 256 if tt >= 256 else (tt // 8) * 8
    tt = max(8, min((tt // 8) * 8, _round_up(Tn, 8)))
    num_t = pl.cdiv(Tn, tt)
    Tp = num_t * tt
    if Tp != Tn:
        X = jnp.pad(X, ((0, 0), (0, Tp - Tn), (0, 0)))

    # ---- host-side lane padding + head fusion + dtype packing ----
    w1 = jnp.pad(params["w1"], ((0, 0), (0, Hp - H))).astype(mxu_dtype)          # [D, Hp]
    b1 = jnp.pad(params["b1"], ((0, 0), (0, Hp - H))).astype(f32)                # [1, Hp]

    w2p = jnp.pad(params["w2"], ((0, Hp - H), (0, Hp - H)))
    wsp = jnp.pad(params["ws"], ((0, Hp - H), (0, Cp - C)))
    w2s = jnp.concatenate([w2p, wsp], axis=1).astype(mxu_dtype)                  # [Hp, Hp+Cp]
    b2s = jnp.concatenate(
        [jnp.pad(params["b2"], ((0, 0), (0, Hp - H))),
         jnp.pad(params["bs"], ((0, 0), (0, Cp - C)))], axis=1).astype(f32)

    wcp = jnp.pad(params["wc"], ((0, Hp - H), (0, Cp - C)))
    wlp = jnp.pad(params["wl"], ((0, Hp - H), (0, Lw - 1)))                      # col 0 = wl
    wcl = jnp.concatenate([wcp, wlp], axis=1).astype(mxu_dtype)                  # [Hp, Cp+LANE]
    # padded class columns get a -1e9 bias so the softmax over Cp is exact
    bcp = jnp.concatenate(
        [params["bc"].astype(f32), jnp.full((1, Cp - C), -1e9, f32)], axis=1)
    blp = jnp.pad(params["bl"].astype(f32), ((0, 0), (0, Lw - 1)))
    bcl = jnp.concatenate([bcp, blp], axis=1)                                    # [1, Cp+LANE]

    A_hat_p = jnp.pad(A_hat.astype(f32), ((0, 0), (0, 0), (0, Cp - C)))
    Xc = X.astype(mxu_dtype)
    T_lens = T_lens.astype(jnp.int32)

    def _make_call(single_buffer_consts):
        def _const_spec(shape):
            idx = lambda b, t, tl: (0, 0)
            if single_buffer_consts and hasattr(pl, "Buffered"):
                try:
                    # constants never re-DMA: single-buffer them (halves VMEM footprint)
                    return pl.BlockSpec(shape, idx, pipeline_mode=pl.Buffered(1))
                except TypeError:
                    pass
            return pl.BlockSpec(shape, idx)

        grid_spec = pltpu.PrefetchScalarGridSpec(
            num_scalar_prefetch=1,
            grid=(B, num_t),
            in_specs=[
                pl.BlockSpec((1, tt, D), lambda b, t, tl: (b, t, 0)),       # X tile
                pl.BlockSpec((1, 1, Cp), lambda b, t, tl: (b, 0, 0)),       # A_hat
                _const_spec((D, Hp)), _const_spec((1, Hp)),                 # w1, b1
                _const_spec((Hp, Hp + Cp)), _const_spec((1, Hp + Cp)),      # [w2|ws]
                _const_spec((Hp, Cp + Lw)), _const_spec((1, Cp + Lw)),      # [wc|wl]
            ],
            out_specs=[
                pl.BlockSpec((1, tt, Wout), lambda b, t, tl: (b, t, 0)),    # slab
                pl.BlockSpec((1, 1, Cp), lambda b, t, tl: (b, 0, 0)),       # V (resident)
            ],
        )

        out_shapes = (
            jax.ShapeDtypeStruct((B, Tp, Wout), out_dtype),                 # Z|S|A|Y|L slab
            jax.ShapeDtypeStruct((B, 1, Cp), jnp.float32),                  # V
        )

        cost = pl.CostEstimate(
            flops=2 * B * Tp * (D * Hp + Hp * (Hp + Cp) + Hp * (Cp + Lw)),
            transcendentals=B * Tp * (Cp + Lw),
            bytes_accessed=(B * Tp * D * in_item + B * Cp * 4 + weight_bytes
                            + B * Tp * Wout * out_item + B * Cp * 4),
        )

        kernel = functools.partial(general_model_kernel,
                                   include_z=include_Z,
                                   inv_temp=1.0 / SOFTMAX_TEMP)
        return pl.pallas_call(
            kernel,
            grid_spec=grid_spec,
            out_shape=out_shapes,
            compiler_params=pltpu.CompilerParams(
                dimension_semantics=("parallel", "arbitrary"),
                vmem_limit_bytes=vmem_limit,
            ),
            cost_estimate=cost,
        )

    args = (T_lens, Xc, A_hat_p, w1, b1, w2s, b2s, wcl, bcl)
    try:
        slab, Vp = _make_call(True)(*args)
    except Exception:
        # fall back to default double-buffered constants if Buffered(1) is unsupported
        slab, Vp = _make_call(False)(*args)

    # Split the lane-dense slab back into the module's named outputs (pads sliced off).
    off = 0
    Z = None
    if include_Z:
        Z = slab[:, :Tn, 0:H]
        off = Hp
    S = slab[:, :Tn, off:off + C]
    A = slab[:, :Tn, off + Cp:off + Cp + C]
    Y = slab[:, :Tn, off + 2 * Cp:off + 2 * Cp + C]
    L = slab[:, :Tn, off + 3 * Cp:off + 3 * Cp + 1]
    V = Vp[:, 0, :C]
    return {"S": S, "Y": Y, "Z": Z, "A": A, "L": L, "V": V}


def reference_forward(T_lens, X, A_hat, params):
    """Pure-JAX reference of the same forward pass (f32)."""
    z = jnp.maximum(X @ params["w1"] + params["b1"], 0.0)
    zp = jnp.maximum(z @ params["w2"] + params["b2"], 0.0)
    s = z @ params["ws"] + params["bs"]
    a = jax.nn.softmax((zp @ params["wc"] + params["bc"]) / SOFTMAX_TEMP, axis=-1)
    l = jax.nn.sigmoid(zp @ params["wl"] + params["bl"])
    y = a * l
    w = y * A_hat
    Tn = X.shape[1]
    mask = (jnp.arange(Tn)[None, :, None] < T_lens[:, None, None]).astype(jnp.float32)
    v = jnp.sum(w * s * mask, axis=1) / jnp.maximum(T_lens, 1)[:, None].astype(jnp.float32)
    return {"S": s, "Y": y, "Z": z, "A": a, "L": l, "V": v}


def init_params(key, D, H, C):
    ks = jax.random.split(key, 6)
    scale = 0.1
    return {
        "w1": scale * jax.random.normal(ks[0], (D, H), jnp.float32),
        "b1": jnp.zeros((1, H), jnp.float32),
        "w2": scale * jax.random.normal(ks[1], (H, H), jnp.float32),
        "b2": jnp.zeros((1, H), jnp.float32),
        "ws": scale * jax.random.normal(ks[2], (H, C), jnp.float32),
        "bs": jnp.zeros((1, C), jnp.float32),
        "wc": scale * jax.random.normal(ks[3], (H, C), jnp.float32),
        "bc": jnp.zeros((1, C), jnp.float32),
        "wl": scale * jax.random.normal(ks[4], (H, 1), jnp.float32),
        "bl": jnp.zeros((1, 1), jnp.float32),
    }


if __name__ == "__main__":
    B, Tn, D, H, C = 2, 16, 32, 32, 8
    key = jax.random.PRNGKey(0)
    k_x, k_a, k_p = jax.random.split(key, 3)

    X = jax.random.normal(k_x, (B, Tn, D), jnp.float32)                       # batch.feats
    A_hat = (jax.random.uniform(k_a, (B, 1, C)) > 0.5).astype(jnp.float32)    # set labels
    T_lens = jnp.array([Tn, 11], dtype=jnp.int32)                             # batch.T (variable length)
    params = init_params(k_p, D, H, C)

    ref = reference_forward(T_lens, X, A_hat, params)

    # 1) exact path (f32 MXU + f32 slab), tt=8 -> 2 time tiles per batch element,
    #    exercising the resident-V accumulator; only the approx softmax
    #    reciprocal (~2e-4 rel) differs from the pure-JAX reference.
    out = general_model_forward(T_lens, X, A_hat, params, tt=8,
                                mxu_dtype=jnp.float32, out_dtype=jnp.float32)
    out = jax.tree_util.tree_map(jax.block_until_ready, out)
    for name in ("S", "Y", "Z", "A", "L", "V"):
        assert out[name].shape == ref[name].shape, name
        assert jnp.allclose(out[name], ref[name], atol=1e-3, rtol=1e-3), name

    # 2) default fast path: bf16 matmul inputs (f32 accumulation) + bf16 slab.
    out_bf = general_model_forward(T_lens, X, A_hat, params)
    out_bf = jax.tree_util.tree_map(jax.block_until_ready, out_bf)
    for name in ("S", "Y", "Z", "A", "L", "V"):
        assert out_bf[name].shape == ref[name].shape, name
        assert jnp.allclose(out_bf[name].astype(jnp.float32), ref[name],
                            atol=5e-2, rtol=5e-2), name

    print("KERNEL_OK")
</pallas_src>

<mosaic_0001>
module attributes {stable_mosaic.version = 11 : i64} {
  func.func @general_model_kernel(%arg0: i32, %arg1: i32, %arg2: memref<2xi32, #tpu.memory_space<smem>>, %arg3: memref<1x8x32xf32, #tpu.memory_space<vmem>>, %arg4: memref<1x1x128xf32, #tpu.memory_space<vmem>>, %arg5: memref<32x128xf32, #tpu.memory_space<vmem>>, %arg6: memref<1x128xf32, #tpu.memory_space<vmem>>, %arg7: memref<128x256xf32, #tpu.memory_space<vmem>>, %arg8: memref<1x256xf32, #tpu.memory_space<vmem>>, %arg9: memref<128x256xf32, #tpu.memory_space<vmem>>, %arg10: memref<1x256xf32, #tpu.memory_space<vmem>>, %arg11: memref<1x8x640xf32, #tpu.memory_space<vmem>>, %arg12: memref<1x1x128xf32, #tpu.memory_space<vmem>>) attributes {dimension_semantics = [#tpu.dimension_semantics<parallel>, #tpu.dimension_semantics<arbitrary>], iteration_bounds = array<i64: 2, 2>, scalar_prefetch = 1 : i64, scratch_operands = 0 : i64, tpu.core_type = #tpu.core_type<tc>, window_params = [{transform_indices = @transform_0, window_bounds = array<i64: 1, 8, 32>}, {transform_indices = @transform_1, window_bounds = array<i64: 1, 1, 128>}, {pipeline_mode = #tpu.pipeline_mode<synchronous>, transform_indices = @transform_2, window_bounds = array<i64: 32, 128>}, {pipeline_mode = #tpu.pipeline_mode<synchronous>, transform_indices = @transform_3, window_bounds = array<i64: 1, 128>}, {pipeline_mode = #tpu.pipeline_mode<synchronous>, transform_indices = @transform_4, window_bounds = array<i64: 128, 256>}, {pipeline_mode = #tpu.pipeline_mode<synchronous>, transform_indices = @transform_5, window_bounds = array<i64: 1, 256>}, {pipeline_mode = #tpu.pipeline_mode<synchronous>, transform_indices = @transform_6, window_bounds = array<i64: 128, 256>}, {pipeline_mode = #tpu.pipeline_mode<synchronous>, transform_indices = @transform_7, window_bounds = array<i64: 1, 256>}, {transform_indices = @transform_8, window_bounds = array<i64: 1, 8, 640>}, {transform_indices = @transform_9, window_bounds = array<i64: 1, 1, 128>}]} {
    %c0_i32 = arith.constant 0 : i32
    %0 = arith.cmpi eq, %arg1, %c0_i32 : i32
    %1 = arith.extui %0 : i1 to i32
    %c0_i32_0 = arith.constant 0 : i32
    %2 = arith.cmpi ne, %1, %c0_i32_0 : i32
    scf.if %2 {
      %cst_45 = arith.constant 0.000000e+00 : f32
      %91 = vector.broadcast %cst_45 : f32 to vector<1x1x128xf32>
      %c0_46 = arith.constant 0 : index
      %c0_47 = arith.constant 0 : index
      %c0_48 = arith.constant 0 : index
      %92 = vector.load %arg12[%c0_46, %c0_47, %c0_48] : memref<1x1x128xf32, #tpu.memory_space<vmem>>, vector<1x1x128xf32>
      tpu.vector_store %arg12[%c0_46, %c0_47, %c0_48], %91 {strides = array<i32>} : memref<1x1x128xf32, #tpu.memory_space<vmem>>, vector<1x1x128xf32>,
    } else {
    }
    %c0 = arith.constant 0 : index
    %c0_1 = arith.constant 0 : index
    %c0_2 = arith.constant 0 : index
    %3 = vector.load %arg3[%c0, %c0_1, %c0_2] : memref<1x8x32xf32, #tpu.memory_space<vmem>>, vector<1x8x32xf32>
    %4 = vector.shape_cast %3 : vector<1x8x32xf32> to vector<8x32xf32>
    %c0_3 = arith.constant 0 : index
    %c0_4 = arith.constant 0 : index
    %5 = vector.load %arg5[%c0_3, %c0_4] : memref<32x128xf32, #tpu.memory_space<vmem>>, vector<32x128xf32>
    %cst = arith.constant dense<0.000000e+00> : vector<8x128xf32>
    %6 = tpu.matmul %4, %5, %cst {dimension_numbers = #tpu.dot_dimension_numbers<[1], [0], [0], [1], [0, 0, 1, 1], [], []>} : vector<8x32xf32>, vector<32x128xf32>, vector<8x128xf32> -> vector<8x128xf32>
    %c0_5 = arith.constant 0 : index
    %c0_6 = arith.constant 0 : index
    %7 = vector.load %arg6[%c0_5, %c0_6] : memref<1x128xf32, #tpu.memory_space<vmem>>, vector<1x128xf32>
    %8 = vector.broadcast %7 : vector<1x128xf32> to vector<8x128xf32>
    %9 = arith.addf %6, %8 : vector<8x128xf32>
    %cst_7 = arith.constant 0.000000e+00 : f32
    %10 = vector.broadcast %cst_7 : f32 to vector<8x128xf32>
    %11 = arith.maximumf %9, %10 : vector<8x128xf32>
    %c0_8 = arith.constant 0 : index
    %c0_9 = arith.constant 0 : index
    %c0_10 = arith.constant 0 : index
    %12 = vector.load %arg11[%c0_8, %c0_9, %c0_10] : memref<1x8x640xf32, #tpu.memory_space<vmem>>, vector<1x8x128xf32>
    %13 = vector.shape_cast %12 : vector<1x8x128xf32> to vector<8x128xf32>
    %14 = vector.shape_cast %11 : vector<8x128xf32> to vector<1x8x128xf32>
    tpu.vector_store %arg11[%c0_8, %c0_9, %c0_10], %14 {strides = array<i32>} : memref<1x8x640xf32, #tpu.memory_space<vmem>>, vector<1x8x128xf32>,
    %c0_11 = arith.constant 0 : index
    %c0_12 = arith.constant 0 : index
    %15 = vector.load %arg7[%c0_11, %c0_12] : memref<128x256xf32, #tpu.memory_space<vmem>>, vector<128x256xf32>
    %cst_13 = arith.constant dense<0.000000e+00> : vector<8x256xf32>
    %16 = tpu.matmul %11, %15, %cst_13 {dimension_numbers = #tpu.dot_dimension_numbers<[1], [0], [0], [1], [0, 0, 1, 1], [], []>} : vector<8x128xf32>, vector<128x256xf32>, vector<8x256xf32> -> vector<8x256xf32>
    %c0_14 = arith.constant 0 : index
    %c0_15 = arith.constant 0 : index
    %17 = vector.load %arg8[%c0_14, %c0_15] : memref<1x256xf32, #tpu.memory_space<vmem>>, vector<1x256xf32>
    %18 = vector.broadcast %17 : vector<1x256xf32> to vector<8x256xf32>
    %19 = arith.addf %16, %18 : vector<8x256xf32>
    %20 = vector.extract_strided_slice %19 {offsets = [0, 0], sizes = [8, 128], strides = [1, 1]} : vector<8x256xf32> to vector<8x128xf32>
    %cst_16 = arith.constant 0.000000e+00 : f32
    %21 = vector.broadcast %cst_16 : f32 to vector<8x128xf32>
    %22 = arith.maximumf %20, %21 : vector<8x128xf32>
    %23 = vector.extract_strided_slice %19 {offsets = [0, 128], sizes = [8, 128], strides = [1, 1]} : vector<8x256xf32> to vector<8x128xf32>
    %c0_17 = arith.constant 0 : index
    %c0_18 = arith.constant 0 : index
    %c128 = arith.constant 128 : index
    %24 = vector.load %arg11[%c0_17, %c0_18, %c128] : memref<1x8x640xf32, #tpu.memory_space<vmem>>, vector<1x8x128xf32>
    %25 = vector.shape_cast %24 : vector<1x8x128xf32> to vector<8x128xf32>
    %26 = vector.shape_cast %23 : vector<8x128xf32> to vector<1x8x128xf32>
    tpu.vector_store %arg11[%c0_17, %c0_18, %c128], %26 {strides = array<i32>} : memref<1x8x640xf32, #tpu.memory_space<vmem>>, vector<1x8x128xf32>,
    %c0_19 = arith.constant 0 : index
    %c0_20 = arith.constant 0 : index
    %27 = vector.load %arg9[%c0_19, %c0_20] : memref<128x256xf32, #tpu.memory_space<vmem>>, vector<128x256xf32>
    %cst_21 = arith.constant dense<0.000000e+00> : vector<8x256xf32>
    %28 = tpu.matmul %22, %27, %cst_21 {dimension_numbers = #tpu.dot_dimension_numbers<[1], [0], [0], [1], [0, 0, 1, 1], [], []>} : vector<8x128xf32>, vector<128x256xf32>, vector<8x256xf32> -> vector<8x256xf32>
    %c0_22 = arith.constant 0 : index
    %c0_23 = arith.constant 0 : index
    %29 = vector.load %arg10[%c0_22, %c0_23] : memref<1x256xf32, #tpu.memory_space<vmem>>, vector<1x256xf32>
    %30 = vector.broadcast %29 : vector<1x256xf32> to vector<8x256xf32>
    %31 = arith.addf %28, %30 : vector<8x256xf32>
    %32 = vector.extract_strided_slice %31 {offsets = [0, 0], sizes = [8, 128], strides = [1, 1]} : vector<8x256xf32> to vector<8x128xf32>
    %cst_24 = arith.constant 2.000000e+00 : f32
    %33 = vector.broadcast %cst_24 : f32 to vector<8x128xf32>
    %34 = arith.mulf %32, %33 : vector<8x128xf32>
    %cst_25 = arith.constant dense<0xFF800000> : vector<8xf32>
    %35 = vector.multi_reduction <maximumf>, %34, %cst_25 [1] : vector<8x128xf32> to vector<8xf32>
    %36 = vector.shape_cast %35 : vector<8xf32> to vector<8x1xf32>
    %37 = vector.broadcast %36 : vector<8x1xf32> to vector<8x128xf32>
    %38 = arith.subf %34, %37 : vector<8x128xf32>
    %39 = math.exp %38 : vector<8x128xf32>
    %cst_26 = arith.constant dense<0.000000e+00> : vector<8xf32>
    %40 = vector.multi_reduction <add>, %39, %cst_26 [1] : vector<8x128xf32> to vector<8xf32>
    %41 = vector.shape_cast %40 : vector<8xf32> to vector<8x1xf32>
    %42 = tpu.reciprocal %41 {approx = true} : vector<8x1xf32> -> vector<8x1xf32>
    %43 = vector.broadcast %42 : vector<8x1xf32> to vector<8x128xf32>
    %44 = arith.mulf %39, %43 : vector<8x128xf32>
    %c0_27 = arith.constant 0 : index
    %c0_28 = arith.constant 0 : index
    %c256 = arith.constant 256 : index
    %45 = vector.load %arg11[%c0_27, %c0_28, %c256] : memref<1x8x640xf32, #tpu.memory_space<vmem>>, vector<1x8x128xf32>
    %46 = vector.shape_cast %45 : vector<1x8x128xf32> to vector<8x128xf32>
    %47 = vector.shape_cast %44 : vector<8x128xf32> to vector<1x8x128xf32>
    tpu.vector_store %arg11[%c0_27, %c0_28, %c256], %47 {strides = array<i32>} : memref<1x8x640xf32, #tpu.memory_space<vmem>>, vector<1x8x128xf32>,
    %48 = vector.extract_strided_slice %31 {offsets = [0, 128], sizes = [8, 128], strides = [1, 1]} : vector<8x256xf32> to vector<8x128xf32>
    %49 = arith.negf %48 : vector<8x128xf32>
    %50 = math.exp %49 : vector<8x128xf32>
    %cst_29 = arith.constant 1.000000e+00 : f32
    %51 = vector.broadcast %cst_29 : f32 to vector<8x128xf32>
    %52 = arith.addf %51, %50 : vector<8x128xf32>
    %53 = arith.divf %51, %52 : vector<8x128xf32>
    %54 = vector.extract_strided_slice %53 {offsets = [0, 0], sizes = [8, 1], strides = [1, 1]} : vector<8x128xf32> to vector<8x1xf32>
    %55 = vector.broadcast %54 : vector<8x1xf32> to vector<8x128xf32>
    %56 = arith.mulf %44, %55 : vector<8x128xf32>
    %c0_30 = arith.constant 0 : index
    %c0_31 = arith.constant 0 : index
    %c384 = arith.constant 384 : index
    %57 = vector.load %arg11[%c0_30, %c0_31, %c384] : memref<1x8x640xf32, #tpu.memory_space<vmem>>, vector<1x8x128xf32>
    %58 = vector.shape_cast %57 : vector<1x8x128xf32> to vector<8x128xf32>
    %59 = vector.shape_cast %56 : vector<8x128xf32> to vector<1x8x128xf32>
    tpu.vector_store %arg11[%c0_30, %c0_31, %c384], %59 {strides = array<i32>} : memref<1x8x640xf32, #tpu.memory_space<vmem>>, vector<1x8x128xf32>,
    %c0_32 = arith.constant 0 : index
    %c0_33 = arith.constant 0 : index
    %c512 = arith.constant 512 : index
    %60 = vector.load %arg11[%c0_32, %c0_33, %c512] : memref<1x8x640xf32, #tpu.memory_space<vmem>>, vector<1x8x128xf32>
    %61 = vector.shape_cast %60 : vector<1x8x128xf32> to vector<8x128xf32>
    %62 = vector.shape_cast %53 : vector<8x128xf32> to vector<1x8x128xf32>
    tpu.vector_store %arg11[%c0_32, %c0_33, %c512], %62 {strides = array<i32>} : memref<1x8x640xf32, #tpu.memory_space<vmem>>, vector<1x8x128xf32>,
    %63 = arith.index_cast %arg0 : i32 to index
    %64 = memref.load %arg2[%63] : memref<2xi32, #tpu.memory_space<smem>>
    %c8_i32 = arith.constant 8 : i32
    %65 = arith.muli %arg1, %c8_i32 : i32
    %66 = tpu.iota {dimensions = array<i32: 0>} : vector<8x1xi32>
    %67 = vector.broadcast %65 : i32 to vector<8x1xi32>
    %68 = arith.addi %67, %66 : vector<8x1xi32>
    %69 = vector.broadcast %64 : i32 to vector<8x1xi32>
    %70 = arith.cmpi slt, %68, %69 : vector<8x1xi32>
    %71 = arith.extui %70 : vector<8x1xi1> to vector<8x1xi32>
    %72 = arith.sitofp %71 : vector<8x1xi32> to vector<8x1xf32>
    %c0_34 = arith.constant 0 : index
    %c0_35 = arith.constant 0 : index
    %c0_36 = arith.constant 0 : index
    %73 = vector.load %arg12[%c0_34, %c0_35, %c0_36] : memref<1x1x128xf32, #tpu.memory_space<vmem>>, vector<1x1x128xf32>
    %74 = vector.shape_cast %73 : vector<1x1x128xf32> to vector<1x128xf32>
    %c0_37 = arith.constant 0 : index
    %c0_38 = arith.constant 0 : index
    %c0_39 = arith.constant 0 : index
    %75 = vector.load %arg4[%c0_37, %c0_38, %c0_39] : memref<1x1x128xf32, #tpu.memory_space<vmem>>, vector<1x1x128xf32>
    %76 = vector.shape_cast %75 : vector<1x1x128xf32> to vector<1x128xf32>
    %77 = vector.broadcast %76 : vector<1x128xf32> to vector<8x128xf32>
    %78 = arith.mulf %56, %77 : vector<8x128xf32>
    %79 = arith.mulf %78, %23 : vector<8x128xf32>
    %80 = vector.broadcast %72 : vector<8x1xf32> to vector<8x128xf32>
    %81 = arith.mulf %79, %80 : vector<8x128xf32>
    %cst_40 = arith.constant dense<0.000000e+00> : vector<128xf32>
    %82 = vector.multi_reduction <add>, %81, %cst_40 [0] : vector<8x128xf32> to vector<128xf32>
    %83 = vector.shape_cast %82 : vector<128xf32> to vector<1x128xf32>
    %84 = arith.addf %74, %83 : vector<1x128xf32>
    %c0_41 = arith.constant 0 : index
    %c0_42 = arith.constant 0 : index
    %c0_43 = arith.constant 0 : index
    %85 = vector.load %arg12[%c0_41, %c0_42, %c0_43] : memref<1x1x128xf32, #tpu.memory_space<vmem>>, vector<1x1x128xf32>
    %86 = vector.shape_cast %85 : vector<1x1x128xf32> to vector<1x128xf32>
    %87 = vector.shape_cast %84 : vector<1x128xf32> to vector<1x1x128xf32>
    tpu.vector_store %arg12[%c0_41, %c0_42, %c0_43], %87 {strides = array<i32>} : memref<1x1x128xf32, #tpu.memory_space<vmem>>, vector<1x1x128xf32>,
    %c1_i32 = arith.constant 1 : i32
    %88 = arith.cmpi eq, %arg1, %c1_i32 : i32
    %89 = arith.extui %88 : i1 to i32
    %c0_i32_44 = arith.constant 0 : i32
    %90 = arith.cmpi ne, %89, %c0_i32_44 : i32
    scf.if %90 {
      %c1_i32_45 = arith.constant 1 : i32
      %91 = arith.maxsi %64, %c1_i32_45 : i32
      %92 = arith.sitofp %91 : i32 to f32
      %cst_46 = arith.constant 1.000000e+00 : f32
      %93 = arith.divf %cst_46, %92 : f32
      %c0_47 = arith.constant 0 : index
      %c0_48 = arith.constant 0 : index
      %c0_49 = arith.constant 0 : index
      %94 = vector.load %arg12[%c0_47, %c0_48, %c0_49] : memref<1x1x128xf32, #tpu.memory_space<vmem>>, vector<1x1x128xf32>
      %95 = vector.shape_cast %94 : vector<1x1x128xf32> to vector<1x128xf32>
      %96 = vector.broadcast %93 : f32 to vector<1x128xf32>
      %97 = arith.mulf %95, %96 : vector<1x128xf32>
      %c0_50 = arith.constant 0 : index
      %c0_51 = arith.constant 0 : index
      %c0_52 = arith.constant 0 : index
      %98 = vector.load %arg12[%c0_50, %c0_51, %c0_52] : memref<1x1x128xf32, #tpu.memory_space<vmem>>, vector<1x1x128xf32>
      %99 = vector.shape_cast %98 : vector<1x1x128xf32> to vector<1x128xf32>
      %100 = vector.shape_cast %97 : vector<1x128xf32> to vector<1x1x128xf32>
      tpu.vector_store %arg12[%c0_50, %c0_51, %c0_52], %100 {strides = array<i32>} : memref<1x1x128xf32, #tpu.memory_space<vmem>>, vector<1x1x128xf32>,
    } else {
    }
    return
  }
  func.func @transform_0(%arg0: i32, %arg1: i32, %arg2: memref<2xi32, #tpu.memory_space<smem>>) -> (i32, i32, i32) {
    %c0_i32 = arith.constant 0 : i32
    %c0_i32_0 = arith.constant 0 : i32
    return %arg0, %arg1, %c0_i32 : i32, i32, i32
  }
  func.func @transform_1(%arg0: i32, %arg1: i32, %arg2: memref<2xi32, #tpu.memory_space<smem>>) -> (i32, i32, i32) {
    %c0_i32 = arith.constant 0 : i32
    %c0_i32_0 = arith.constant 0 : i32
    %c0_i32_1 = arith.constant 0 : i32
    return %arg0, %c0_i32, %c0_i32_0 : i32, i32, i32
  }
  func.func @transform_2(%arg0: i32, %arg1: i32, %arg2: memref<2xi32, #tpu.memory_space<smem>>) -> (i32, i32) {
    %c0_i32 = arith.constant 0 : i32
    %c0_i32_0 = arith.constant 0 : i32
    %c0_i32_1 = arith.constant 0 : i32
    return %c0_i32, %c0_i32_0 : i32, i32
  }
  func.func @transform_3(%arg0: i32, %arg1: i32, %arg2: memref<2xi32, #tpu.memory_space<smem>>) -> (i32, i32) {
    %c0_i32 = arith.constant 0 : i32
    %c0_i32_0 = arith.constant 0 : i32
    %c0_i32_1 = arith.constant 0 : i32
    return %c0_i32, %c0_i32_0 : i32, i32
  }
  func.func @transform_4(%arg0: i32, %arg1: i32, %arg2: memref<2xi32, #tpu.memory_space<smem>>) -> (i32, i32) {
    %c0_i32 = arith.constant 0 : i32
    %c0_i32_0 = arith.constant 0 : i32
    %c0_i32_1 = arith.constant 0 : i32
    return %c0_i32, %c0_i32_0 : i32, i32
  }
  func.func @transform_5(%arg0: i32, %arg1: i32, %arg2: memref<2xi32, #tpu.memory_space<smem>>) -> (i32, i32) {
    %c0_i32 = arith.constant 0 : i32
    %c0_i32_0 = arith.constant 0 : i32
    %c0_i32_1 = arith.constant 0 : i32
    return %c0_i32, %c0_i32_0 : i32, i32
  }
  func.func @transform_6(%arg0: i32, %arg1: i32, %arg2: memref<2xi32, #tpu.memory_space<smem>>) -> (i32, i32) {
    %c0_i32 = arith.constant 0 : i32
    %c0_i32_0 = arith.constant 0 : i32
    %c0_i32_1 = arith.constant 0 : i32
    return %c0_i32, %c0_i32_0 : i32, i32
  }
  func.func @transform_7(%arg0: i32, %arg1: i32, %arg2: memref<2xi32, #tpu.memory_space<smem>>) -> (i32, i32) {
    %c0_i32 = arith.constant 0 : i32
    %c0_i32_0 = arith.constant 0 : i32
    %c0_i32_1 = arith.constant 0 : i32
    return %c0_i32, %c0_i32_0 : i32, i32
  }
  func.func @transform_8(%arg0: i32, %arg1: i32, %arg2: memref<2xi32, #tpu.memory_space<smem>>) -> (i32, i32, i32) {
    %c0_i32 = arith.constant 0 : i32
    %c0_i32_0 = arith.constant 0 : i32
    return %arg0, %arg1, %c0_i32 : i32, i32, i32
  }
  func.func @transform_9(%arg0: i32, %arg1: i32, %arg2: memref<2xi32, #tpu.memory_space<smem>>) -> (i32, i32, i32) {
    %c0_i32 = arith.constant 0 : i32
    %c0_i32_0 = arith.constant 0 : i32
    %c0_i32_1 = arith.constant 0 : i32
    return %arg0, %c0_i32, %c0_i32_0 : i32, i32, i32
  }
}

module attributes {stable_mosaic.version = 11 : i64} {
  func.func @general_model_kernel(%arg0: i32, %arg1: i32, %arg2: memref<2xi32, #tpu.memory_space<smem>>, %arg3: memref<1x8x32xf32, #tpu.memory_space<vmem>>, %arg4: memref<1x1x128xf32, #tpu.memory_space<vmem>>, %arg5: memref<32x128xf32, #tpu.memory_space<vmem>>, %arg6: memref<1x128xf32, #tpu.memory_space<vmem>>, %arg7: memref<128x256xf32, #tpu.memory_space<vmem>>, %arg8: memref<1x256xf32, #tpu.memory_space<vmem>>, %arg9: memref<128x256xf32, #tpu.memory_space<vmem>>, %arg10: memref<1x256xf32, #tpu.memory_space<vmem>>, %arg11: memref<1x8x640xf32, #tpu.memory_space<vmem>>, %arg12: memref<1x1x128xf32, #tpu.memory_space<vmem>>) attributes {dimension_semantics = [#tpu.dimension_semantics<parallel>, #tpu.dimension_semantics<arbitrary>], iteration_bounds = array<i64: 2, 2>, scalar_prefetch = 1 : i64, scratch_operands = 0 : i64, tpu.core_type = #tpu.core_type<tc>, window_params = [{transform_indices = @transform_0, window_bounds = array<i64: 1, 8, 32>}, {transform_indices = @transform_1, window_bounds = array<i64: 1, 1, 128>}, {pipeline_mode = #tpu.pipeline_mode<synchronous>, transform_indices = @transform_2, window_bounds = array<i64: 32, 128>}, {pipeline_mode = #tpu.pipeline_mode<synchronous>, transform_indices = @transform_3, window_bounds = array<i64: 1, 128>}, {pipeline_mode = #tpu.pipeline_mode<synchronous>, transform_indices = @transform_4, window_bounds = array<i64: 128, 256>}, {pipeline_mode = #tpu.pipeline_mode<synchronous>, transform_indices = @transform_5, window_bounds = array<i64: 1, 256>}, {pipeline_mode = #tpu.pipeline_mode<synchronous>, transform_indices = @transform_6, window_bounds = array<i64: 128, 256>}, {pipeline_mode = #tpu.pipeline_mode<synchronous>, transform_indices = @transform_7, window_bounds = array<i64: 1, 256>}, {transform_indices = @transform_8, window_bounds = array<i64: 1, 8, 640>}, {transform_indices = @transform_9, window_bounds = array<i64: 1, 1, 128>}]} {
    %c0_i32 = arith.constant 0 : i32
    %0 = arith.cmpi eq, %arg1, %c0_i32 : i32
    %1 = arith.extui %0 : i1 to i32
    %c0_i32_0 = arith.constant 0 : i32
    %2 = arith.cmpi ne, %1, %c0_i32_0 : i32
    scf.if %2 {
      %cst_45 = arith.constant 0.000000e+00 : f32
      %91 = vector.broadcast %cst_45 : f32 to vector<1x1x128xf32>
      %c0_46 = arith.constant 0 : index
      %c0_47 = arith.constant 0 : index
      %c0_48 = arith.constant 0 : index
      %92 = vector.load %arg12[%c0_46, %c0_47, %c0_48] : memref<1x1x128xf32, #tpu.memory_space<vmem>>, vector<1x1x128xf32>
      tpu.vector_store %arg12[%c0_46, %c0_47, %c0_48], %91 {strides = array<i32>} : memref<1x1x128xf32, #tpu.memory_space<vmem>>, vector<1x1x128xf32>,
    } else {
    }
    %c0 = arith.constant 0 : index
    %c0_1 = arith.constant 0 : index
    %c0_2 = arith.constant 0 : index
    %3 = vector.load %arg3[%c0, %c0_1, %c0_2] : memref<1x8x32xf32, #tpu.memory_space<vmem>>, vector<1x8x32xf32>
    %4 = vector.shape_cast %3 : vector<1x8x32xf32> to vector<8x32xf32>
    %c0_3 = arith.constant 0 : index
    %c0_4 = arith.constant 0 : index
    %5 = vector.load %arg5[%c0_3, %c0_4] : memref<32x128xf32, #tpu.memory_space<vmem>>, vector<32x128xf32>
    %cst = arith.constant dense<0.000000e+00> : vector<8x128xf32>
    %6 = tpu.matmul %4, %5, %cst {dimension_numbers = #tpu.dot_dimension_numbers<[1], [0], [0], [1], [0, 0, 1, 1], [], []>} : vector<8x32xf32>, vector<32x128xf32>, vector<8x128xf32> -> vector<8x128xf32>
    %c0_5 = arith.constant 0 : index
    %c0_6 = arith.constant 0 : index
    %7 = vector.load %arg6[%c0_5, %c0_6] : memref<1x128xf32, #tpu.memory_space<vmem>>, vector<1x128xf32>
    %8 = vector.broadcast %7 : vector<1x128xf32> to vector<8x128xf32>
    %9 = arith.addf %6, %8 : vector<8x128xf32>
    %cst_7 = arith.constant 0.000000e+00 : f32
    %10 = vector.broadcast %cst_7 : f32 to vector<8x128xf32>
    %11 = arith.maximumf %9, %10 : vector<8x128xf32>
    %c0_8 = arith.constant 0 : index
    %c0_9 = arith.constant 0 : index
    %c0_10 = arith.constant 0 : index
    %12 = vector.load %arg11[%c0_8, %c0_9, %c0_10] : memref<1x8x640xf32, #tpu.memory_space<vmem>>, vector<1x8x128xf32>
    %13 = vector.shape_cast %12 : vector<1x8x128xf32> to vector<8x128xf32>
    %14 = vector.shape_cast %11 : vector<8x128xf32> to vector<1x8x128xf32>
    tpu.vector_store %arg11[%c0_8, %c0_9, %c0_10], %14 {strides = array<i32>} : memref<1x8x640xf32, #tpu.memory_space<vmem>>, vector<1x8x128xf32>,
    %c0_11 = arith.constant 0 : index
    %c0_12 = arith.constant 0 : index
    %15 = vector.load %arg7[%c0_11, %c0_12] : memref<128x256xf32, #tpu.memory_space<vmem>>, vector<128x256xf32>
    %cst_13 = arith.constant dense<0.000000e+00> : vector<8x256xf32>
    %16 = tpu.matmul %11, %15, %cst_13 {dimension_numbers = #tpu.dot_dimension_numbers<[1], [0], [0], [1], [0, 0, 1, 1], [], []>} : vector<8x128xf32>, vector<128x256xf32>, vector<8x256xf32> -> vector<8x256xf32>
    %c0_14 = arith.constant 0 : index
    %c0_15 = arith.constant 0 : index
    %17 = vector.load %arg8[%c0_14, %c0_15] : memref<1x256xf32, #tpu.memory_space<vmem>>, vector<1x256xf32>
    %18 = vector.broadcast %17 : vector<1x256xf32> to vector<8x256xf32>
    %19 = arith.addf %16, %18 : vector<8x256xf32>
    %20 = vector.extract_strided_slice %19 {offsets = [0, 0], sizes = [8, 128], strides = [1, 1]} : vector<8x256xf32> to vector<8x128xf32>
    %cst_16 = arith.constant 0.000000e+00 : f32
    %21 = vector.broadcast %cst_16 : f32 to vector<8x128xf32>
    %22 = arith.maximumf %20, %21 : vector<8x128xf32>
    %23 = vector.extract_strided_slice %19 {offsets = [0, 128], sizes = [8, 128], strides = [1, 1]} : vector<8x256xf32> to vector<8x128xf32>
    %c0_17 = arith.constant 0 : index
    %c0_18 = arith.constant 0 : index
    %c128 = arith.constant 128 : index
    %24 = vector.load %arg11[%c0_17, %c0_18, %c128] : memref<1x8x640xf32, #tpu.memory_space<vmem>>, vector<1x8x128xf32>
    %25 = vector.shape_cast %24 : vector<1x8x128xf32> to vector<8x128xf32>
    %26 = vector.shape_cast %23 : vector<8x128xf32> to vector<1x8x128xf32>
    tpu.vector_store %arg11[%c0_17, %c0_18, %c128], %26 {strides = array<i32>} : memref<1x8x640xf32, #tpu.memory_space<vmem>>, vector<1x8x128xf32>,
    %c0_19 = arith.constant 0 : index
    %c0_20 = arith.constant 0 : index
    %27 = vector.load %arg9[%c0_19, %c0_20] : memref<128x256xf32, #tpu.memory_space<vmem>>, vector<128x256xf32>
    %cst_21 = arith.constant dense<0.000000e+00> : vector<8x256xf32>
    %28 = tpu.matmul %22, %27, %cst_21 {dimension_numbers = #tpu.dot_dimension_numbers<[1], [0], [0], [1], [0, 0, 1, 1], [], []>} : vector<8x128xf32>, vector<128x256xf32>, vector<8x256xf32> -> vector<8x256xf32>
    %c0_22 = arith.constant 0 : index
    %c0_23 = arith.constant 0 : index
    %29 = vector.load %arg10[%c0_22, %c0_23] : memref<1x256xf32, #tpu.memory_space<vmem>>, vector<1x256xf32>
    %30 = vector.broadcast %29 : vector<1x256xf32> to vector<8x256xf32>
    %31 = arith.addf %28, %30 : vector<8x256xf32>
    %32 = vector.extract_strided_slice %31 {offsets = [0, 0], sizes = [8, 128], strides = [1, 1]} : vector<8x256xf32> to vector<8x128xf32>
    %cst_24 = arith.constant 2.000000e+00 : f32
    %33 = vector.broadcast %cst_24 : f32 to vector<8x128xf32>
    %34 = arith.mulf %32, %33 : vector<8x128xf32>
    %cst_25 = arith.constant dense<0xFF800000> : vector<8xf32>
    %35 = vector.multi_reduction <maximumf>, %34, %cst_25 [1] : vector<8x128xf32> to vector<8xf32>
    %36 = vector.shape_cast %35 : vector<8xf32> to vector<8x1xf32>
    %37 = vector.broadcast %36 : vector<8x1xf32> to vector<8x128xf32>
    %38 = arith.subf %34, %37 : vector<8x128xf32>
    %39 = math.exp %38 : vector<8x128xf32>
    %cst_26 = arith.constant dense<0.000000e+00> : vector<8xf32>
    %40 = vector.multi_reduction <add>, %39, %cst_26 [1] : vector<8x128xf32> to vector<8xf32>
    %41 = vector.shape_cast %40 : vector<8xf32> to vector<8x1xf32>
    %42 = tpu.reciprocal %41 {approx = true} : vector<8x1xf32> -> vector<8x1xf32>
    %43 = vector.broadcast %42 : vector<8x1xf32> to vector<8x128xf32>
    %44 = arith.mulf %39, %43 : vector<8x128xf32>
    %c0_27 = arith.constant 0 : index
    %c0_28 = arith.constant 0 : index
    %c256 = arith.constant 256 : index
    %45 = vector.load %arg11[%c0_27, %c0_28, %c256] : memref<1x8x640xf32, #tpu.memory_space<vmem>>, vector<1x8x128xf32>
    %46 = vector.shape_cast %45 : vector<1x8x128xf32> to vector<8x128xf32>
    %47 = vector.shape_cast %44 : vector<8x128xf32> to vector<1x8x128xf32>
    tpu.vector_store %arg11[%c0_27, %c0_28, %c256], %47 {strides = array<i32>} : memref<1x8x640xf32, #tpu.memory_space<vmem>>, vector<1x8x128xf32>,
    %48 = vector.extract_strided_slice %31 {offsets = [0, 128], sizes = [8, 128], strides = [1, 1]} : vector<8x256xf32> to vector<8x128xf32>
    %49 = arith.negf %48 : vector<8x128xf32>
    %50 = math.exp %49 : vector<8x128xf32>
    %cst_29 = arith.constant 1.000000e+00 : f32
    %51 = vector.broadcast %cst_29 : f32 to vector<8x128xf32>
    %52 = arith.addf %51, %50 : vector<8x128xf32>
    %53 = arith.divf %51, %52 : vector<8x128xf32>
    %54 = vector.extract_strided_slice %53 {offsets = [0, 0], sizes = [8, 1], strides = [1, 1]} : vector<8x128xf32> to vector<8x1xf32>
    %55 = vector.broadcast %54 : vector<8x1xf32> to vector<8x128xf32>
    %56 = arith.mulf %44, %55 : vector<8x128xf32>
    %c0_30 = arith.constant 0 : index
    %c0_31 = arith.constant 0 : index
    %c384 = arith.constant 384 : index
    %57 = vector.load %arg11[%c0_30, %c0_31, %c384] : memref<1x8x640xf32, #tpu.memory_space<vmem>>, vector<1x8x128xf32>
    %58 = vector.shape_cast %57 : vector<1x8x128xf32> to vector<8x128xf32>
    %59 = vector.shape_cast %56 : vector<8x128xf32> to vector<1x8x128xf32>
    tpu.vector_store %arg11[%c0_30, %c0_31, %c384], %59 {strides = array<i32>} : memref<1x8x640xf32, #tpu.memory_space<vmem>>, vector<1x8x128xf32>,
    %c0_32 = arith.constant 0 : index
    %c0_33 = arith.constant 0 : index
    %c512 = arith.constant 512 : index
    %60 = vector.load %arg11[%c0_32, %c0_33, %c512] : memref<1x8x640xf32, #tpu.memory_space<vmem>>, vector<1x8x128xf32>
    %61 = vector.shape_cast %60 : vector<1x8x128xf32> to vector<8x128xf32>
    %62 = vector.shape_cast %53 : vector<8x128xf32> to vector<1x8x128xf32>
    tpu.vector_store %arg11[%c0_32, %c0_33, %c512], %62 {strides = array<i32>} : memref<1x8x640xf32, #tpu.memory_space<vmem>>, vector<1x8x128xf32>,
    %63 = arith.index_cast %arg0 : i32 to index
    %64 = memref.load %arg2[%63] : memref<2xi32, #tpu.memory_space<smem>>
    %c8_i32 = arith.constant 8 : i32
    %65 = arith.muli %arg1, %c8_i32 : i32
    %66 = tpu.iota {dimensions = array<i32: 0>} : vector<8x1xi32>
    %67 = vector.broadcast %65 : i32 to vector<8x1xi32>
    %68 = arith.addi %67, %66 : vector<8x1xi32>
    %69 = vector.broadcast %64 : i32 to vector<8x1xi32>
    %70 = arith.cmpi slt, %68, %69 : vector<8x1xi32>
    %71 = arith.extui %70 : vector<8x1xi1> to vector<8x1xi32>
    %72 = arith.sitofp %71 : vector<8x1xi32> to vector<8x1xf32>
    %c0_34 = arith.constant 0 : index
    %c0_35 = arith.constant 0 : index
    %c0_36 = arith.constant 0 : index
    %73 = vector.load %arg12[%c0_34, %c0_35, %c0_36] : memref<1x1x128xf32, #tpu.memory_space<vmem>>, vector<1x1x128xf32>
    %74 = vector.shape_cast %73 : vector<1x1x128xf32> to vector<1x128xf32>
    %c0_37 = arith.constant 0 : index
    %c0_38 = arith.constant 0 : index
    %c0_39 = arith.constant 0 : index
    %75 = vector.load %arg4[%c0_37, %c0_38, %c0_39] : memref<1x1x128xf32, #tpu.memory_space<vmem>>, vector<1x1x128xf32>
    %76 = vector.shape_cast %75 : vector<1x1x128xf32> to vector<1x128xf32>
    %77 = vector.broadcast %76 : vector<1x128xf32> to vector<8x128xf32>
    %78 = arith.mulf %56, %77 : vector<8x128xf32>
    %79 = arith.mulf %78, %23 : vector<8x128xf32>
    %80 = vector.broadcast %72 : vector<8x1xf32> to vector<8x128xf32>
    %81 = arith.mulf %79, %80 : vector<8x128xf32>
    %cst_40 = arith.constant dense<0.000000e+00> : vector<128xf32>
    %82 = vector.multi_reduction <add>, %81, %cst_40 [0] : vector<8x128xf32> to vector<128xf32>
    %83 = vector.shape_cast %82 : vector<128xf32> to vector<1x128xf32>
    %84 = arith.addf %74, %83 : vector<1x128xf32>
    %c0_41 = arith.constant 0 : index
    %c0_42 = arith.constant 0 : index
    %c0_43 = arith.constant 0 : index
    %85 = vector.load %arg12[%c0_41, %c0_42, %c0_43] : memref<1x1x128xf32, #tpu.memory_space<vmem>>, vector<1x1x128xf32>
    %86 = vector.shape_cast %85 : vector<1x1x128xf32> to vector<1x128xf32>
    %87 = vector.shape_cast %84 : vector<1x128xf32> to vector<1x1x128xf32>
    tpu.vector_store %arg12[%c0_41, %c0_42, %c0_43], %87 {strides = array<i32>} : memref<1x1x128xf32, #tpu.memory_space<vmem>>, vector<1x1x128xf32>,
    %c1_i32 = arith.constant 1 : i32
    %88 = arith.cmpi eq, %arg1, %c1_i32 : i32
    %89 = arith.extui %88 : i1 to i32
    %c0_i32_44 = arith.constant 0 : i32
    %90 = arith.cmpi ne, %89, %c0_i32_44 : i32
    scf.if %90 {
      %c1_i32_45 = arith.constant 1 : i32
      %91 = arith.maxsi %64, %c1_i32_45 : i32
      %92 = arith.sitofp %91 : i32 to f32
      %cst_46 = arith.constant 1.000000e+00 : f32
      %93 = arith.divf %cst_46, %92 : f32
      %c0_47 = arith.constant 0 : index
      %c0_48 = arith.constant 0 : index
      %c0_49 = arith.constant 0 : index
      %94 = vector.load %arg12[%c0_47, %c0_48, %c0_49] : memref<1x1x128xf32, #tpu.memory_space<vmem>>, vector<1x1x128xf32>
      %95 = vector.shape_cast %94 : vector<1x1x128xf32> to vector<1x128xf32>
      %96 = vector.broadcast %93 : f32 to vector<1x128xf32>
      %97 = arith.mulf %95, %96 : vector<1x128xf32>
      %c0_50 = arith.constant 0 : index
      %c0_51 = arith.constant 0 : index
      %c0_52 = arith.constant 0 : index
      %98 = vector.load %arg12[%c0_50, %c0_51, %c0_52] : memref<1x1x128xf32, #tpu.memory_space<vmem>>, vector<1x1x128xf32>
      %99 = vector.shape_cast %98 : vector<1x1x128xf32> to vector<1x128xf32>
      %100 = vector.shape_cast %97 : vector<1x128xf32> to vector<1x1x128xf32>
      tpu.vector_store %arg12[%c0_50, %c0_51, %c0_52], %100 {strides = array<i32>} : memref<1x1x128xf32, #tpu.memory_space<vmem>>, vector<1x1x128xf32>,
    } else {
    }
    return
  }
  func.func @transform_0(%arg0: i32, %arg1: i32, %arg2: memref<2xi32, #tpu.memory_space<smem>>) -> (i32, i32, i32) {
    %c0_i32 = arith.constant 0 : i32
    %c0_i32_0 = arith.constant 0 : i32
    return %arg0, %arg1, %c0_i32 : i32, i32, i32
  }
  func.func @transform_1(%arg0: i32, %arg1: i32, %arg2: memref<2xi32, #tpu.memory_space<smem>>) -> (i32, i32, i32) {
    %c0_i32 = arith.constant 0 : i32
    %c0_i32_0 = arith.constant 0 : i32
    %c0_i32_1 = arith.constant 0 : i32
    return %arg0, %c0_i32, %c0_i32_0 : i32, i32, i32
  }
  func.func @transform_2(%arg0: i32, %arg1: i32, %arg2: memref<2xi32, #tpu.memory_space<smem>>) -> (i32, i32) {
    %c0_i32 = arith.constant 0 : i32
    %c0_i32_0 = arith.constant 0 : i32
    %c0_i32_1 = arith.constant 0 : i32
    return %c0_i32, %c0_i32_0 : i32, i32
  }
  func.func @transform_3(%arg0: i32, %arg1: i32, %arg2: memref<2xi32, #tpu.memory_space<smem>>) -> (i32, i32) {
    %c0_i32 = arith.constant 0 : i32
    %c0_i32_0 = arith.constant 0 : i32
    %c0_i32_1 = arith.constant 0 : i32
    return %c0_i32, %c0_i32_0 : i32, i32
  }
  func.func @transform_4(%arg0: i32, %arg1: i32, %arg2: memref<2xi32, #tpu.memory_space<smem>>) -> (i32, i32) {
    %c0_i32 = arith.constant 0 : i32
    %c0_i32_0 = arith.constant 0 : i32
    %c0_i32_1 = arith.constant 0 : i32
    return %c0_i32, %c0_i32_0 : i32, i32
  }
  func.func @transform_5(%arg0: i32, %arg1: i32, %arg2: memref<2xi32, #tpu.memory_space<smem>>) -> (i32, i32) {
    %c0_i32 = arith.constant 0 : i32
    %c0_i32_0 = arith.constant 0 : i32
    %c0_i32_1 = arith.constant 0 : i32
    return %c0_i32, %c0_i32_0 : i32, i32
  }
  func.func @transform_6(%arg0: i32, %arg1: i32, %arg2: memref<2xi32, #tpu.memory_space<smem>>) -> (i32, i32) {
    %c0_i32 = arith.constant 0 : i32
    %c0_i32_0 = arith.constant 0 : i32
    %c0_i32_1 = arith.constant 0 : i32
    return %c0_i32, %c0_i32_0 : i32, i32
  }
  func.func @transform_7(%arg0: i32, %arg1: i32, %arg2: memref<2xi32, #tpu.memory_space<smem>>) -> (i32, i32) {
    %c0_i32 = arith.constant 0 : i32
    %c0_i32_0 = arith.constant 0 : i32
    %c0_i32_1 = arith.constant 0 : i32
    return %c0_i32, %c0_i32_0 : i32, i32
  }
  func.func @transform_8(%arg0: i32, %arg1: i32, %arg2: memref<2xi32, #tpu.memory_space<smem>>) -> (i32, i32, i32) {
    %c0_i32 = arith.constant 0 : i32
    %c0_i32_0 = arith.constant 0 : i32
    return %arg0, %arg1, %c0_i32 : i32, i32, i32
  }
  func.func @transform_9(%arg0: i32, %arg1: i32, %arg2: memref<2xi32, #tpu.memory_space<smem>>) -> (i32, i32, i32) {
    %c0_i32 = arith.constant 0 : i32
    %c0_i32_0 = arith.constant 0 : i32
    %c0_i32_1 = arith.constant 0 : i32
    return %arg0, %c0_i32, %c0_i32_0 : i32, i32, i32
  }
}

</mosaic_0001>

<bundles_post_ra>
// kernel: tpu_custom_call.1
= control target key start
LH: loop header
LB: loop body
LE: loop exit
PB: predicated region body
PF: predicated region fallthrough
CT: control target
= control target key end

     0   :  { %s1554_s16 = smov [#allocation3]   ;;  %s1966_s0 = inlined_call_operand.hbm [shape: s32[2], index: 0, kind: input, shape index: {}]   ;;  %s1967_s1 = inlined_call_operand.hbm [shape: f32[2,16,32], index: 1, kind: input, shape index: {}]   ;;  %s1968_s2 = inlined_call_operand.hbm [shape: f32[2,1,128], index: 2, kind: input, shape index: {}]   ;;  %s1969_s3 = inlined_call_operand.hbm [shape: f32[32,128], index: 3, kind: input, shape index: {}]   ;;  %s1970_s4 = inlined_call_operand.hbm [shape: f32[1,128], index: 4, kind: input, shape index: {}]   ;;  %s1971_s5 = inlined_call_operand.hbm [shape: f32[128,256], index: 5, kind: input, shape index: {}]   ;;  %s1972_s6 = inlined_call_operand.vmem [shape: f32[1,256], index: 6, kind: input, shape index: {}]   ;;  %s1973_s7 = inlined_call_operand.hbm [shape: f32[128,256], index: 7, kind: input, shape index: {}]   ;;  %s1974_s8 = inlined_call_operand.vmem [shape: f32[1,256], index: 8, kind: input, shape index: {}]   ;;  %s1975_s9 = inlined_call_operand.hbm [shape: f32[2,16,640], index: 9, kind: output, shape index: {0}]   ;;  %s1976_s10 = inlined_call_operand.hbm [shape: f32[2,1,128], index: 10, kind: output, shape index: {1}]  }
   0x1   :  { %1990 = sst [smem:[#allocation37_spill]] %s1967_s1  ;;  %s17_s15 = sshll.u32 %s1966_s0, 4  ;;  %s18_s15 = int_to_ptr.hbm [resolvable:$true] %s17_s15 }
   0x2   :  { %1991 = sst [smem:[#allocation38_spill]] %s1968_s2 }
   0x3   :  { %1992 = sst [smem:[#allocation39_spill]] %s1969_s3 }
   0x4   :  { %1993 = sst [smem:[#allocation40_spill]] %s1970_s4 }
   0x5   :  { %1994 = sst [smem:[#allocation41_spill]] %s1971_s5 }
   0x6   :  { %1995 = sst [smem:[#allocation42_spill]] %s1972_s6 }
   0x7   :  { %1996 = sst [smem:[#allocation43_spill]] %s1973_s7 }
   0x8   :  { %1997 = sst [smem:[#allocation44_spill]] %s1974_s8 }
   0x9   :  { %1998 = sst [smem:[#allocation45_spill]] %s1975_s9 }
   0xa   :  { %1999 = sst [smem:[#allocation46_spill]] %s1976_s10 }
   0xb   :  { %20 = dma.hbm_to_smem %s18_s15, 16, %s1554_s16, [#allocation2] }
   0xc   :  { %1480 = dma.done.wait [#allocation2], 16 }
   0xd   :  { %1481 = vsyncadd [#allocation2], 4294967280 }
   0xe   :  { %23 = sfence }
   0xf   :  { %24 = vsyncpa [#allocation5], 0 }
  0x10   :  { %26 = vsyncpa [#allocation5 + $0x1], 0 }
  0x11   :  { %27 = vsyncpa [#allocation8], 0 }
  0x12   :  { %29 = vsyncpa [#allocation8 + $0x1], 0 }
  0x13   :  { %30 = vsyncpa [#allocation11], 0 }
  0x14   :  { %31 = vsyncpa [#allocation14], 0 }
  0x15   :  { %32 = vsyncpa [#allocation6], 0 }
  0x16   :  { %34 = vsyncpa [#allocation6 + $0x1], 0 }
  0x17   :  { %35 = vsyncpa [#allocation17], 0 }
  0x18   :  { %37 = vsyncpa [#allocation17 + $0x1], 0  ;;  %s1624_s17 = smov 0   ;;  %s1626_s18 = smov 0  }
  0x19   :  { %s1628_s0 = smov 0   ;;  %s1630_s19 = smov 0  }
  0x1a   :  { %s1632_s20 = smov 0   ;;  %s1634_s21 = smov 0  }
  0x1b   :  { %s1636_s22 = smov 0   ;;  %s1638_s23 = smov 0  }
  0x1c   :  { %s1640_s24 = smov 0   ;;  %s1642_s25 = smov 0  }
  0x1d   :  { %s1644_s26 = smov 0  }
  0x1e LB: > { %2000 = sst [smem:[#allocation26_spill]] %s1528_s20  ;;  %s1680_s27 = sadd.s32 4294967295, %s1552_s26   ;;  %s1552_s26 = sphi %s1644_s26, %s43_s26   ;;  %s1548_s25 = sphi %s1642_s25, %s2047_s25   ;;  %s1544_s24 = sphi %s1640_s24, %s2046_s24   ;;  %s1540_s23 = sphi %s1638_s23, %s2045_s23   ;;  %s1536_s22 = sphi %s1636_s22, %s2044_s22   ;;  %s1532_s21 = sphi %s1634_s21, %s2043_s21   ;;  %s1528_s20 = sphi %s1632_s20, %s2042_s20   ;;  %s1524_s19 = sphi %s1630_s19, %s2041_s19   ;;  %s1520_s0 = sphi %s1628_s0, %s2050_s0   ;;  %s1516_s18 = sphi %s1626_s18, %s2049_s18   ;;  %s1512_s17 = sphi %s1624_s17, %s2048_s17  }
  0x1f   : > { %2001 = sst [smem:[#allocation27_spill]] %s1532_s21  ;;  %p984_p0 = scmp.ge.s32.totalorder %s1552_s26, 1 }
  0x20   : > { %2002 = sst [smem:[#allocation28_spill]] %s1540_s23  ;;  %p78_p1 = scmp.eq.s32.totalorder %s1680_s27, 0 }
  0x21   : > { %2003 = sst [smem:[#allocation29_spill]] %s1544_s24  ;;  %p294_p2 = scmp.lt.s32.totalorder %s1552_s26, 5 }
  0x22   : > { %2004 = sst [smem:[#allocation30_spill]] %s1548_s25  ;;  %s1555_s12 = smov [#allocation9]  }
  0x23   : > { %s2005_s3 = sld [smem:[#allocation39_spill]]  ;;  %p1688_p3 = pnand %p984_p0, %p294_p2 }
  0x24   : > { %s307_s13 = sshll.u32 %s1555_s12, 4  ;;  %s2008_s4 = sld [smem:[#allocation40_spill]]  ;;  %s308_s13 = int_to_ptr.vmem [resolvable:$true] %s307_s13 }
  0x25   : > { %p1037_p4 = pneg %p1688_p3  ;;  %s1556_s29 = smov 128  }
  0x26   : > { %s1558_s9 = smov [#allocation10]   ;;  %s2009_s5 = sld [smem:[#allocation41_spill]] }
  0x27   : > { %p1696_p5 = pnand %p1037_p4, %p78_p1  ;;  %s322_s12 = sshll.u32 %s1558_s9, 4  ;;  %s323_s12 = int_to_ptr.vmem [resolvable:$true] %s322_s12 }
  0x28   : > { %s1559_s15 = smov [#allocation12]   ;;  %s2010_s7 = sld [smem:[#allocation43_spill]] }
  0x29   : > { %s305_s30 = sshll.u32 %s2005_s3, 4  ;;  %s1557_s3 = smov 8   ;;  %s306_s30 = int_to_ptr.hbm [resolvable:$true] %s305_s30 }
  0x2a   : > { %s320_s28 = sshll.u32 %s2008_s4, 4  ;;  %s333_s16 = sshll.u32 %s1559_s15, 4  ;;  %s321_s28 = int_to_ptr.hbm [resolvable:$true] %s320_s28  ;;  %s334_s16 = int_to_ptr.vmem [resolvable:$true] %s333_s16 }
  0x2b   : > { %1040 = dma.hbm_to_vmem [thread:$0]  (!%p1696_p5), %s306_s30, 512, %s308_s13, [#allocation8], %s1556_s29, %s1556_s29, %s1557_s3  }
  0x2c   : > { %s331_s8 = sshll.u32 %s2009_s5, 4  ;;  %s1560_s10 = smov 256   ;;  %s332_s8 = int_to_ptr.hbm [resolvable:$true] %s331_s8 }
  0x2d   : > { %1043 = dma.hbm_to_vmem [thread:$0]  (!%p1696_p5), %s321_s28, 16, %s323_s12, [#allocation11]  }
  0x2e   : > { %s348_s30 = sshll.u32 %s2010_s7, 4  ;;  %s1561_s23 = smov 16   ;;  %s349_s30 = int_to_ptr.hbm [resolvable:$true] %s348_s30 }
  0x2f   : > { %1046 = dma.hbm_to_vmem [thread:$0]  (!%p1696_p5), %s332_s8, 4096, %s334_s16, [#allocation11], %s1560_s10, %s1560_s10, %s1561_s23  }
  0x30   : > { %s1562_s13 = smov [#allocation13]   ;;  %s983_s29 = sadd.s32 4294967294, %s1552_s26  }
  0x31   : > { %s350_s28 = sshll.u32 %s1562_s13, 4  ;;  %s52_s12 = sadd.s32 1, %s1544_s24  ;;  %s351_s28 = int_to_ptr.vmem [resolvable:$true] %s350_s28 }
  0x32   : > { %1049 = dma.hbm_to_vmem [thread:$0]  (!%p1696_p5), %s349_s30, 4096, %s351_s28, [#allocation14], %s1560_s10, %s1560_s10, %s1561_s23  }
  0x33   : > { %p53_p6 = scmp.ge.s32.totalorder %s52_s12, 2  ;;  %s55_s15 = sadd.s32 1, %s1548_s25 }
  0x34   : > { %s64_s3 = sadd.s32 1, %s1532_s21  ;;  %p71_p7 = scmp.ne.s32.totalorder %s1532_s21, %s1528_s20 }
  0x35   : > { %s2052_s12 = smov (%p53_p6, %s52_s12), 0  ;;  %s2054_s15 = smov (!%p53_p6, %s55_s15), %s1548_s25 }
  0x36   : > { %2011 = sst [smem:[#allocation31_spill]] %s2052_s12  ;;  %s60_s8 = ssub.s32 %s1544_s24, %s2052_s12 }
  0x37   : > { %p72_p8 = scmp.eq.s32.totalorder %s1552_s26, 0  ;;  %p57_p9 = scmp.ge.s32.totalorder %s2054_s15, 2 }
  0x38   : > { %p77_p10 = scmp.ne.s32.totalorder %s1528_s20, %s1524_s19  ;;  %p1984_p12 = scmp.eq.s32.totalorder %s1680_s27, 3 }
  0x39   : > { %p1733_p11 = por %p72_p8, %p71_p7  ;;  %s2056_s15 = smov (%p57_p9, %s2054_s15), 0 }
  0x3a   : > { %2013 = sst [smem:[#allocation32_spill]] %s2056_s15  ;;  %p1742_p13 = por %p78_p1, %p77_p10 }
  0x3b   : > { %p1748_p0 = por %p1984_p12, %p71_p7  ;;  %s59_s30 = ssub.s32 %s1548_s25, %s2056_s15 }
  0x3c   : > { %p1754_p2 = scmp.eq.s32.totalorder %s983_s29, 3  ;;  %s61_s23 = sor.u32 %s60_s8, %s59_s30 }
  0x3d   : > { %p88_p4 = scmp.eq.s32.totalorder %s59_s30, 0  ;;  %p62_p5 = scmp.eq.s32.totalorder %s61_s23, 0 }
  0x3e   : > { %p1760_p6 = por %p1754_p2, %p77_p10  ;;  %p1985_p7 = scmp.lt.s32.totalorder %s1552_s26, 4 }
  0x3f   : > { %s367_s28 = sand.u32 1, %s1532_s21   ;;  %s991_s5 = sshll.u32 %s1548_s25, 1 }
  0x40   : > { %s2017_s13 = scalar_select %p1760_p6, 1, 0 }
  0x41   : > { %s1767_s4 = scalar_select %p62_p5, %s1532_s21, %s64_s3  }
  0x42   : > { %2018 = sst [smem:[#allocation33_spill]] %s2017_s13  ;;  %s990_s29 = sshll.u32 %s367_s28, 3 }
  0x43   : > { %2019 = sst [smem:[#allocation34_spill]] %s1767_s4  ;;  %s375_s8 = sadd.s32 %s1544_s24, %s991_s5 }
  0x44   : > { %s371_s23 = scalar_lea.vmem [#allocation4], %s990_s29  ;;  %s992_s15 = sshll.u32 %s375_s8, 3 }
  0x45   : > { %s381_s7 = sshll.u32 %s371_s23, 4  ;;  %s2020_s1 = sld [smem:[#allocation37_spill]]  ;;  %s382_s7 = int_to_ptr.vmem [resolvable:$true] %s381_s7 }
  0x46   : > { %p1051_p9 = pnand %p1985_p7, %p1733_p11  ;;  %s368_s5 = scalar_lea.sflag [#allocation5], %s367_s28 }
  0x47   : > { %s90_s29 = sadd.s32 1, %s1520_s0  ;;  %p97_p10 = scmp.ne.s32.totalorder %s1520_s0, %s1516_s18 }
  0x48   : > { %s1781_s23 = scalar_select %p88_p4, %s1520_s0, %s90_s29  }
  0x49   : > { %p103_p5 = scmp.ne.s32.totalorder %s1516_s18, %s1512_s17  ;;  %s388_s8 = sand.u32 1, %s1552_s26  }
  0x4a   : > { %2021 = sst [smem:[#allocation35_spill]] %s1781_s23  ;;  %s390_s24 = sand.u32 1, %s1520_s0  }
  0x4b   : > { %s377_s3 = scalar_lea.hbm %s2020_s1, %s992_s15  ;;  %p99_p12 = por %p97_p10, %p72_p8 }
  0x4c   : > { %s379_s4 = sshll.u32 %s377_s3, 4  ;;  %p1793_p6 = por %p103_p5, %p78_p1  ;;  %s380_s4 = int_to_ptr.hbm [resolvable:$true] %s379_s4 }
  0x4d   : > { %1053 = dma.hbm_to_vmem [thread:$0]  (!%p1051_p9), %s380_s4, 128, %s382_s7, %s368_s5  }
  0x4e   : > { %p2023_p11 = scmp.eq.s32.totalorder %s1680_s27, 3  ;;  %p1805_p9 = por %p1754_p2, %p103_p5 }
  0x4f   : > { %s2027_s2 = sld [smem:[#allocation38_spill]]  ;;  %s391_s13 = scalar_lea.vmem [#allocation7], %s390_s24 }
  0x50   : > { %p1799_p7 = por %p2023_p11, %p97_p10  ;;  %s398_s28 = sshll.u32 %s391_s13, 4  ;;  %s399_s28 = int_to_ptr.vmem [resolvable:$true] %s398_s28 }
  0x51   : > { %s2025_s4 = scalar_select %p1805_p9, 1, 0 }
  0x52   : > { %p2028_p8 = scmp.lt.s32.totalorder %s1552_s26, 4  ;;  %s389_s5 = scalar_lea.sflag [#allocation8], %s388_s8 }
  0x53   : > { %2026 = sst [smem:[#allocation36_spill]] %s2025_s4  ;;  %407 = sbr.rel (%p1688_p3) target bundleno = 899 (0x383), region = 52 }
  0x54   : > { %p1054_p4 = pnand %p2028_p8, %p99_p12  ;;  %s1818_s10 = sand.u32 (!%p1688_p3), 1, %s1528_s20  }
  0x55   : > { %s394_s30 = scalar_lea.hbm %s2027_s2, %s1548_s25  ;;  %s994_s29 = sshll.u32 (!%p1688_p3), %s1818_s10, 3 }
  0x56   : > { %s396_s3 = sshll.u32 %s394_s30, 4  ;;  %s410_s7 = scalar_lea.sflag (!%p1688_p3), [#allocation5], %s1818_s10  ;;  %s397_s3 = int_to_ptr.hbm [resolvable:$true] %s396_s3 }
  0x57   : > { %1056 = dma.hbm_to_vmem [thread:$0]  (!%p1054_p4), %s397_s3, 16, %s399_s28, %s389_s5  }
  0x58   : > { %s1822_s24 = scalar_lea.vmem [#allocation4], %s994_s29 }
  0x59   : > { %1483 = dma.done.wait (%p1742_p13), %s410_s7, 128  }
  0x5a   : > { %1485 = vsyncadd (%p1742_p13), %s410_s7, 4294967168  ;;  %s419_s11 = sand.u32 1, %s1680_s27   ;;  %s1830_s8 = sand.u32 1, %s1516_s18  }
  0x5b   : > { %s420_s14 = scalar_lea.sflag [#allocation8], %s419_s11  ;;  %s422_s30 = scalar_lea.vmem [#allocation7], %s1830_s8 }
  0x5c   : > { %1487 = dma.done.wait (%p1793_p6), %s420_s14, 16  }
  0x5d   : > { %1489 = vsyncadd (%p1793_p6), %s420_s14, 4294967280 }
  0x5e   : > { %1491 = dma.done.wait (%p78_p1), [#allocation8], 512  }
  0x5f   : > { %1493 = vsyncadd (%p78_p1), [#allocation8], 4294966784 }
  0x60   : > { %1495 = dma.done.wait (%p78_p1), [#allocation11], 4112  }
  0x61   : > { %1497 = vsyncadd (%p78_p1), [#allocation11], 4294963184 }
  0x62   : > { %1499 = dma.done.wait (%p78_p1), [#allocation14], 4096  }
  0x63   : > { %1501 = vsyncadd (%p78_p1), [#allocation14], 4294963200  ;;  %s1008_s16 = smul.u32 40, %s1818_s10  ;;  %s1853_s13 = scalar_lea.vmem [#allocation16], %s1830_s8 }
  0x64   : > { %p999_p3 = scmp.ne.s32.totalorder %s1536_s22, 0 }
  0x65   : > { %s1850_s12 = scalar_lea.vmem [#allocation15], %s1008_s16 }
  0x66   : > { %489 = sbr.rel (%p999_p3) target bundleno = 109 (0x6d), region = 80 }
  0x6b   : > { %v1563_v0 = vmov 0.0  }
  0x6c   : > { %490 = vst [vmem:[%s1853_s13] sm:$0x1] %v1563_v0 }
  0x6d PF: > { %v495_v1 = vld [vmem:[#allocation9 + $0x18] sm:$0xff]  ;;  %v494_v2 = vld [vmem:[#allocation9 + $0x10] sm:$0xff]  ;;  %v493_v3 = vld [vmem:[#allocation9 + $0x8] sm:$0xff]  ;;  %vm500_vm0 = vcmask 261120   ;;  %s2029_s6 = sld [smem:[#allocation42_spill]]  ;;  %s1002_s11 = sshll.u32 %s1536_s22, 3 }
  0x6e   : > { %516 = vmatpush.msra.mxu0 %v495_v1  ;;  %v556_v4 = vld [vmem:[#allocation12 + $0xf0] sm:$0xff]  ;;  %v557_v5 = vld [vmem:[#allocation12 + $0xf8] sm:$0xff]  ;;  %v554_v6 = vld [vmem:[#allocation12 + $0xe0] sm:$0xff]  ;;  %s2030_s29 = sld [smem:[#allocation44_spill]]  ;;  %p1004_p1 = scmp.ne.s32.totalorder %s1536_s22, 1 }
  0x6f   : > { %564 = vmatpush.msra.mxu1 %v556_v4  ;;  %v555_v7 = vld [vmem:[#allocation12 + $0xe8] sm:$0xff]  ;;  %584 = vmatpush.msra.mxu2 %v557_v5  ;;  %v552_v8 = vld [vmem:[#allocation12 + $0xd0] sm:$0xff]  ;;  %v492_v9 = vld [vmem:[#allocation9] sm:$0xff]  ;;  %s2031_s7 = sld [smem:[#allocation28_spill]] }
  0x70   : > { %517 = vmatpush.msra.mxu0 %v494_v2  ;;  %v553_v10 = vld [vmem:[#allocation12 + $0xd8] sm:$0xff]  ;;  %v550_v12 = vld [vmem:[#allocation12 + $0xc0] sm:$0xff]  ;;  %v551_v13 = vld [vmem:[#allocation12 + $0xc8] sm:$0xff] }
  0x71   : > { %565 = vmatpush.msra.mxu1 %v554_v6  ;;  %v491_v11 = vld [vmem:[%s1822_s24] sm:$0xff]  ;;  %585 = vmatpush.msra.mxu2 %v555_v7  ;;  %v546_v16 = vld [vmem:[#allocation12 + $0xa0] sm:$0xff]  ;;  %v1176_v0 = vld [vmem:[#allocation10] ss:$0 sm:$0xff] }
  0x72   : > { %518 = vmatpush.msra.mxu0 %v493_v3  ;;  %v548_v14 = vld [vmem:[#allocation12 + $0xb0] sm:$0xff]  ;;  %v549_v15 = vld [vmem:[#allocation12 + $0xb8] sm:$0xff]  ;;  %v547_v17 = vld [vmem:[#allocation12 + $0xa8] sm:$0xff] }
  0x73   : > { %566 = vmatpush.msra.mxu1 %v552_v8  ;;  %586 = vmatpush.msra.mxu2 %v553_v10  ;;  %v544_v18 = vld [vmem:[#allocation12 + $0x90] sm:$0xff]  ;;  %v545_v19 = vld [vmem:[#allocation12 + $0x98] sm:$0xff]  ;;  %v542_v20 = vld [vmem:[#allocation12 + $0x80] sm:$0xff] }
  0x74   : > { %519 = vmatpush.msra.mxu0 %v492_v9  ;;  %v543_v21 = vld [vmem:[#allocation12 + $0x88] sm:$0xff]  ;;  %v540_v22 = vld [vmem:[#allocation12 + $0x70] sm:$0xff]  ;;  %v541_v23 = vld [vmem:[#allocation12 + $0x78] sm:$0xff] }
  0x75   : > { %1000 = vmatmul.msk.f32.vlgmr.msra.gmra.mxu0 %vm500_vm0, %v491_v11  ;;  %567 = vmatpush.msra.mxu1 %v550_v12  ;;  %v538_v24 = vld [vmem:[#allocation12 + $0x60] sm:$0xff]  ;;  %v539_v25 = vld [vmem:[#allocation12 + $0x68] sm:$0xff]  ;;  %v536_v26 = vld [vmem:[#allocation12 + $0x50] sm:$0xff]  ;;  %s1868_s24 = sld [smem:[#allocation3 + %s2031_s7]] }
  0x76   : > { %587 = vmatpush.msra.mxu2 %v551_v13  ;;  %v537_v27 = vld [vmem:[#allocation12 + $0x58] sm:$0xff]  ;;  %v534_v28 = vld [vmem:[#allocation12 + $0x40] sm:$0xff]  ;;  %v535_v29 = vld [vmem:[#allocation12 + $0x48] sm:$0xff] }
  0x77   : > { %568 = vmatpush.msra.mxu1 %v548_v14  ;;  %v532_v30 = vld [vmem:[#allocation12 + $0x30] sm:$0xff]  ;;  %v533_v31 = vld [vmem:[#allocation12 + $0x38] sm:$0xff]  ;;  %v530_v32 = vld [vmem:[#allocation12 + $0x20] sm:$0xff] }
  0x78   : > { %588 = vmatpush.msra.mxu2 %v549_v15  ;;  %v531_v33 = vld [vmem:[#allocation12 + $0x28] sm:$0xff]  ;;  %v528_v34 = vld [vmem:[#allocation12 + $0x10] sm:$0xff]  ;;  %v529_v35 = vld [vmem:[#allocation12 + $0x18] sm:$0xff] }
  0x79   : > { %569 = vmatpush.msra.mxu1 %v546_v16  ;;  %v526_v36 = vld [vmem:[#allocation12] sm:$0xff]  ;;  %v527_v37 = vld [vmem:[#allocation12 + $0x8] sm:$0xff]  ;;  %v636_v38 = vld [vmem:[#allocation13 + $0xf0] sm:$0xff] }
  0x7a   : > { %589 = vmatpush.msra.mxu2 %v547_v17  ;;  %v637_v39 = vld [vmem:[#allocation13 + $0xf8] sm:$0xff]  ;;  %v634_v40 = vld [vmem:[#allocation13 + $0xe0] sm:$0xff]  ;;  %644 = vmatpush.msra.mxu3 %v636_v38  ;;  %v635_v41 = vld [vmem:[#allocation13 + $0xe8] sm:$0xff] }
  0x7b   : > { %570 = vmatpush.msra.mxu1 %v544_v18  ;;  %664 = vmatpush.msrb.mxu0 %v637_v39  ;;  %v632_v42 = vld [vmem:[#allocation13 + $0xd0] sm:$0xff]  ;;  %v633_v43 = vld [vmem:[#allocation13 + $0xd8] sm:$0xff]  ;;  %v630_v44 = vld [vmem:[#allocation13 + $0xc0] sm:$0xff]  ;;  %v1564_v18 = vmov 0   ;;  %p752_p12 = scmp.gt.s32.totalorder (!%p1004_p1), %s1868_s24, 1 }
  0x7c   : > { %590 = vmatpush.msra.mxu2 %v545_v19  ;;  %645 = vmatpush.msra.mxu3 %v634_v40  ;;  %v631_v45 = vld [vmem:[#allocation13 + $0xc8] sm:$0xff]  ;;  %v628_v46 = vld [vmem:[#allocation13 + $0xb0] sm:$0xff]  ;;  %v629_v47 = vld [vmem:[#allocation13 + $0xb8] sm:$0xff] }
  0x7d   : > { %571 = vmatpush.msra.mxu1 %v542_v20  ;;  %665 = vmatpush.msrb.mxu0 %v635_v41  ;;  %v626_v48 = vld [vmem:[#allocation13 + $0xa0] sm:$0xff]  ;;  %v627_v49 = vld [vmem:[#allocation13 + $0xa8] sm:$0xff]  ;;  %v624_v50 = vld [vmem:[#allocation13 + $0x90] sm:$0xff] }
  0x7e   : > { %591 = vmatpush.msra.mxu2 %v543_v21  ;;  %646 = vmatpush.msra.mxu3 %v632_v42  ;;  %v625_v51 = vld [vmem:[#allocation13 + $0x98] sm:$0xff]  ;;  %v622_v52 = vld [vmem:[#allocation13 + $0x80] sm:$0xff]  ;;  %v623_v53 = vld [vmem:[#allocation13 + $0x88] sm:$0xff] }
  0x7f   : > { %572 = vmatpush.msra.mxu1 %v540_v22  ;;  %666 = vmatpush.msrb.mxu0 %v633_v43  ;;  %v620_v54 = vld [vmem:[#allocation13 + $0x70] sm:$0xff]  ;;  %v621_v55 = vld [vmem:[#allocation13 + $0x78] sm:$0xff]  ;;  %v618_v56 = vld [vmem:[#allocation13 + $0x60] sm:$0xff] }
  0x80   : > { %592 = vmatpush.msra.mxu2 %v541_v23  ;;  %647 = vmatpush.msra.mxu3 %v630_v44  ;;  %v619_v57 = vld [vmem:[#allocation13 + $0x68] sm:$0xff]  ;;  %v616_v58 = vld [vmem:[#allocation13 + $0x50] sm:$0xff]  ;;  %v617_v59 = vld [vmem:[#allocation13 + $0x58] sm:$0xff]  ;;  %v724_v44 = vlaneseq }
  0x81   : > { %573 = vmatpush.msra.mxu1 %v538_v24  ;;  %667 = vmatpush.msrb.mxu0 %v631_v45  ;;  %v614_v60 = vld [vmem:[#allocation13 + $0x40] sm:$0xff]  ;;  %v615_v61 = vld [vmem:[#allocation13 + $0x48] sm:$0xff]  ;;  %v612_v62 = vld [vmem:[#allocation13 + $0x30] sm:$0xff] }
  0x82   : > { %593 = vmatpush.msra.mxu2 %v539_v25  ;;  %648 = vmatpush.msra.mxu3 %v628_v46  ;;  %v613_v63 = vld [vmem:[#allocation13 + $0x38] sm:$0xff]  ;;  %v610_v4 = vld [vmem:[#allocation13 + $0x20] sm:$0xff]  ;;  %v611_v5 = vld [vmem:[#allocation13 + $0x28] sm:$0xff]  ;;  %v725_v46 = vshrl.u32 %v724_v44, 7 }
  0x83   : > { %574 = vmatpush.msra.mxu1 %v536_v26  ;;  %668 = vmatpush.msrb.mxu0 %v629_v47  ;;  %v608_v6 = vld [vmem:[#allocation13 + $0x10] sm:$0xff]  ;;  %v609_v7 = vld [vmem:[#allocation13 + $0x18] sm:$0xff]  ;;  %v606_v8 = vld [vmem:[#allocation13] sm:$0xff]  ;;  %v726_v47 = vstv %s1002_s11 }
  0x84   : > { %594 = vmatpush.msra.mxu2 %v537_v27  ;;  %649 = vmatpush.msra.mxu3 %v626_v48  ;;  %v607_v9 = vld [vmem:[#allocation13 + $0x8] sm:$0xff]  ;;  %v558_v10 = vld [vmem:[%s2029_s6] sm:$0x3]  ;;  %v727_v48 = vadd.s32 %v726_v47, %v725_v46 }
  0x85   : > { %575 = vmatpush.msra.mxu1 %v534_v28  ;;  %669 = vmatpush.msrb.mxu0 %v627_v49  ;;  %v560_v11 = vperm.slane %v558_v10, 0  ;;  %v561_v15 = vperm.slane %v558_v10, 1  ;;  %v638_v19 = vld [vmem:[%s2030_s29] sm:$0x3] }
  0x86   : > { %595 = vmatpush.msra.mxu2 %v535_v29  ;;  %650 = vmatpush.msra.mxu3 %v624_v50  ;;  %v641_v20 = vperm.slane %v638_v19, 1  ;;  %v640_v24 = vperm.slane %v638_v19, 0  ;;  %v728_v50 = vstv %s1868_s24 }
  0x87   : > { %576 = vmatpush.msra.mxu1 %v532_v30  ;;  %670 = vmatpush.msrb.mxu0 %v625_v51  ;;  %v1177_v51 = vld [vmem:[%s422_s30] ss:$0 sm:$0xff]  ;;  %vm729_vm5 = vcmp.lt.s32.totalorder %v727_v48, %v728_v50 }
  0x88   : > { %596 = vmatpush.msra.mxu2 %v533_v31  ;;  %651 = vmatpush.msra.mxu3 %v622_v52 }
  0x89   : > { %577 = vmatpush.msra.mxu1 %v530_v32  ;;  %671 = vmatpush.msrb.mxu0 %v623_v53 }
  0x8a   : > { %597 = vmatpush.msra.mxu2 %v531_v33  ;;  %652 = vmatpush.msra.mxu3 %v620_v54 }
  0x8b   : > { %578 = vmatpush.msra.mxu1 %v528_v34  ;;  %672 = vmatpush.msrb.mxu0 %v621_v55 }
  0x8c   : > { %598 = vmatpush.msra.mxu2 %v529_v35  ;;  %653 = vmatpush.msra.mxu3 %v618_v56  ;;  %v1565_v56 = vmov 0.0  }
  0x8d   : > { %579 = vmatpush.msra.mxu1 %v526_v36  ;;  %673 = vmatpush.msrb.mxu0 %v619_v57  ;;  %v1003_v57 = vsel %vm729_vm5, 1.0, %v1565_v56 }
  0x8e   : > { %599 = vmatpush.msra.mxu2 %v527_v37  ;;  %654 = vmatpush.msra.mxu3 %v616_v58 }
  0x8f   : > { %674 = vmatpush.msrb.mxu0 %v617_v59  ;;  %1174 = vset.pattern.permute.xlu1 %v1564_v18 }
  0x90   : > { %655 = vmatpush.msra.mxu3 %v614_v60  ;;  %1175 = vset.pattern.permute.xlu0 %v1564_v18 }
  0x91   : > { %675 = vmatpush.msrb.mxu0 %v615_v61 }
  0x92   : > { %656 = vmatpush.msra.mxu3 %v612_v62 }
  0x93   : > { %676 = vmatpush.msrb.mxu0 %v613_v63 }
  0x94   : > { %657 = vmatpush.msra.mxu3 %v610_v4 }
  0x95   : > { %677 = vmatpush.msrb.mxu0 %v611_v5 }
  0x96   : > { %658 = vmatpush.msra.mxu3 %v608_v6 }
  0x97   : > { %678 = vmatpush.msrb.mxu0 %v609_v7 }
  0x98   : > { %659 = vmatpush.msra.mxu3 %v606_v8 }
  0x99   : > { %679 = vmatpush.msrb.mxu0 %v607_v9 }
  0xf2   : > { %v521_v1 = vpop.f32.mrf.mxu0 }
  0xf3   : > { %v522_v2 = vadd.f32 %v1176_v0, %v521_v1  ;;  %v732_v1 = vld [vmem:[%s1853_s13] sm:$0x1] }
  0xf5   : > { %v524_v3 = vmax.f32 %v522_v2, 0.0 }
  0xf7   : > { %525 = vst [vmem:[%s1850_s12] sm:$0xff] %v524_v3  ;;  %580 = vmatmul.f32.vlgmr.msra.gmra.mxu1 %v524_v3  ;;  %600 = vmatmul.f32.vlgmr.msra.gmra.mxu2 %v524_v3 }
 0x174   : > { %v581_v12 = vpop.f32.mrf.mxu1 }
 0x175   : > { %v582_v13 = vadd.f32 %v581_v12, %v560_v11 }
 0x177   : > { %v604_v14 = vmax.f32 %v582_v13, 0.0 }
 0x179   : > { %660 = vmatmul.f32.vlgmr.msra.gmra.mxu3 %v604_v14  ;;  %680 = vmatmul.f32.vlgmr.msrb.gmra.mxu0 %v604_v14 }
 0x17a   : > { %v601_v16 = vpop.f32.mrf.mxu2 }
 0x17b   : > { %v602_v17 = vadd.f32 %v601_v16, %v561_v15 }
 0x17d   : > { %605 = vst [vmem:[%s1850_s12 + $0x8] sm:$0xff] %v602_v17 }
 0x1f6   : > { %v681_v21 = vpop.f32.mrf.mxu0 }
 0x1f7   : > { %v682_v22 = vadd.f32 %v681_v21, %v641_v20 }
 0x1f9   : > { %v1001_v23 = vmul.f32 -1.442695, %v682_v22 }
 0x1fb   : > { %1178 = vpow2.f32 %v1001_v23 }
 0x1fc   : > { %v661_v25 = vpop.f32.mrf.mxu3 }
 0x1fd   : > { %v662_v26 = vadd.f32 %v661_v25, %v640_v24 }
 0x1ff   : > { %v684_v27 = vmul.f32 2.0, %v662_v26 }
 0x201   : > { %v1179_v28 = vpop.eup %1178  ;;  %685 = vmax.xlane.f32.xlu0 %v684_v27 }
 0x202   : > { %v698_v29 = vadd.f32 1.0, %v1179_v28 }
 0x204   : > { %1180 = vrcp.f32 %v698_v29  ;;  %v710_v33 = vand.u32 2147483648, %v698_v29  ;;  %v708_v35 = vand.u32 2147483647, %v698_v29  ;;  %vm704_vm2 = vweird.f32 %v698_v29 }
 0x206   : > { %v711_v37 = vor.u32 1.1754944e-38, %v710_v33  ;;  %vm709_vm4 = vcmp.eq.f32.partialorder %v708_v35, 8.507059e+37 }
 0x20a   : > { %v1181_v30 = vpop.eup %1180 }
 0x20b   : > { %v700_v31 = vmul.f32 %v1181_v30, %v698_v29  ;;  %vm705_vm1 = vweird.f32 %v1181_v30 }
 0x20c   : > { %vm706_vm3 = vmor %vm704_vm2, %vm705_vm1 }
 0x20d   : > { %v701_v32 = vsub.f32 1.0, %v700_v31 }
 0x20f   : > { %v702_v34 = vmul.f32 %v1181_v30, %v701_v32 }
 0x211   : > { %v703_v36 = vadd.f32 %v1181_v30, %v702_v34 }
 0x213   : > { %v707_v38 = vsel %vm706_vm3, %v1181_v30, %v703_v36 }
 0x214   : > { %v712_v39 = vsel %vm709_vm4, %v711_v37, %v707_v38 }
 0x215   : > { %716 = vperm.xlu1 %1174, %v712_v39   ;;  %721 = vst [vmem:[%s1850_s12 + $0x20] sm:$0xff] %v712_v39 }
 0x274   : > { %v686_v40 = vpop.xlane.xlu0 %685 }
 0x275   : > { %v687_v41 = vsub.f32 %v684_v27, %v686_v40 }
 0x277   : > { %v688_v42 = vmul.f32 1.442695, %v687_v41 }
 0x279   : > { %1182 = vpow2.f32 %v688_v42 }
 0x27f   : > { %v1183_v43 = vpop.eup %1182 }
 0x280   : > { %690 = vadd.xlane.f32.xlu0 %v1183_v43 }
 0x287   : > { %v717_v53 = vpop.permute.xlu1 %716 }
 0x2f3   : > { %v691_v45 = vpop.xlane.xlu0 %690 }
 0x2f4   : > { %1184 = vrcp.f32 %v691_v45 }
 0x2fa   : > { %v1185_v49 = vpop.eup %1184 }
 0x2fb   : > { %v693_v52 = vmul.f32 %v1185_v49, %v1183_v43 }
 0x2fd   : > { %694 = vst [vmem:[%s1850_s12 + $0x10] sm:$0xff] %v693_v52  ;;  %v719_v54 = vmul.f32 %v717_v53, %v693_v52 }
 0x2ff   : > { %720 = vst [vmem:[%s1850_s12 + $0x18] sm:$0xff] %v719_v54  ;;  %v737_v55 = vmul.f32 %v1177_v51, %v719_v54 }
 0x301   : > { %v738_v58 = vmul.f32 %v737_v55, %v602_v17 }
 0x303   : > { %v739_v59 = vmul.f32 %v1003_v57, %v738_v58 }
 0x305   : > { %v740_v60 = vrot.slane %v739_v59, 4 }
 0x307   : > { %v741_v61 = vadd.f32 %v740_v60, %v739_v59 }
 0x309   : > { %v742_v62 = vrot.slane %v741_v61, 2 }
 0x30b   : > { %v743_v63 = vadd.f32 %v742_v62, %v741_v61 }
 0x30d   : > { %v744_v0 = vrot.slane %v743_v63, 1 }
 0x30f   : > { %v745_v2 = vadd.f32 %v744_v0, %v743_v63  ;;  %751 = sbr.rel (%p1004_p1) target bundleno = 863 (0x35f), region = 84 }
 0x311   : > { %v746_v3 = vadd.f32 %v745_v2, %v732_v1 }
 0x313   : > { %747 = vst [vmem:[%s1853_s13] sm:$0x1] %v746_v3 }
 0x314   : > { %s2058_s24 = smov (!%p752_p12, %s1868_s24), 1 }
 0x315   : > { %s754_s14 = scvt.s32.f32 %s2058_s24 }
 0x317   : > { %v755_v4 = vstv %s754_s14 }
 0x318   : > { %1186 = vrcp.f32 %v755_v4  ;;  %v767_v7 = vand.u32 2147483648, %v755_v4  ;;  %vm761_vm6 = vweird.f32 %v755_v4  ;;  %v765_v9 = vand.u32 2147483647, %v755_v4 }
 0x31a   : > { %v768_v11 = vor.u32 1.1754944e-38, %v767_v7  ;;  %vm766_vm9 = vcmp.eq.f32.partialorder %v765_v9, 8.507059e+37  ;;  %v771_v15 = vld [vmem:[%s1853_s13] sm:$0x1] }
 0x31e   : > { %v1187_v5 = vpop.eup %1186 }
 0x31f   : > { %v757_v6 = vmul.f32 %v1187_v5, %v755_v4  ;;  %vm762_vm7 = vweird.f32 %v1187_v5 }
 0x320   : > { %vm763_vm8 = vmor %vm761_vm6, %vm762_vm7 }
 0x321   : > { %v758_v8 = vsub.f32 1.0, %v757_v6 }
 0x323   : > { %v759_v10 = vmul.f32 %v1187_v5, %v758_v8 }
 0x325   : > { %v760_v12 = vadd.f32 %v1187_v5, %v759_v10 }
 0x327   : > { %v764_v13 = vsel %vm763_vm8, %v1187_v5, %v760_v12 }
 0x328   : > { %v769_v14 = vsel %vm766_vm9, %v768_v11, %v764_v13 }
 0x329   : > { %1009 = vpush %v769_v14 }
 0x35a   : > { %s1010_s30 = spop %1009 }
 0x35b   : > { %v772_v16 = vstv %s1010_s30 }
 0x35c   : > { %v773_v17 = vmul.f32 %v772_v16, %v771_v15 }
 0x35e   : > { %774 = vst [vmem:[%s1853_s13] sm:$0x1] %v773_v17 }
 0x35f PF: > { %s2032_s16 = sld [smem:[#allocation28_spill]]  ;;  %s1011_s27 = smul.u32 5, %s1536_s22 }
 0x360   : > { %s795_s3 = sshll.u32 %s1850_s12, 4  ;;  %s2033_s24 = sld [smem:[#allocation46_spill]]  ;;  %s796_s3 = int_to_ptr.vmem [resolvable:$true] %s795_s3 }
 0x361   : > { %s808_s1 = sshll.u32 %s1853_s13, 4  ;;  %s2035_s25 = sld [smem:[#allocation45_spill]]  ;;  %s1894_s1 = int_to_ptr.vmem [resolvable:$true] %s808_s1 }
 0x362   : > { %s776_s22 = scalar_lea.sflag [#allocation6], %s1818_s10 }
 0x365   : > { %s1012_s28 = smul.u32 10, %s2032_s16 }
 0x366   : > { %s2034_s11 = smov %s2033_s24  ;;  %s806_s14 = scalar_lea.hbm %s2033_s24, %s2032_s16 }
 0x367   : > { %s791_s5 = sadd.s32 %s1012_s28, %s1011_s27  ;;  %s2036_s4 = smov %s2035_s25 }
 0x368   : > { %s1005_s30 = sshll.u32 %s791_s5, 3  ;;  %s1896_s23 = sshll.u32 %s806_s14, 4  ;;  %s811_s23 = int_to_ptr.hbm [resolvable:$true] %s1896_s23 }
 0x369   : > { %s793_s21 = scalar_lea.hbm %s2035_s25, %s1005_s30  ;;  %s1400_s2 = scalar_lea.hbm %s2036_s4, 160 }
 0x36a   : > { %s797_s20 = sshll.u32 %s793_s21, 4  ;;  %s798_s20 = int_to_ptr.hbm [resolvable:$true] %s797_s20 }
 0x36b   : > { %s1394_s12 = sshra.s32 %s798_s20, 4  ;;  %s1395_s12 = int_to_ptr.hbm [resolvable:$true] %s1394_s12 }
 0x36c   : > { %s1396_s27 = scalar_lea.hbm %s1395_s12, 40  ;;  %p1401_p10 = scmp.lt.s32.totalorder %s1395_s12, %s2036_s4 }
 0x36d   : > { %p1397_p13 = scmp.ne.s32.totalorder %s1395_s12, %s1396_s27  ;;  %p1402_p5 = scmp.lt.s32.totalorder %s1400_s2, %s1396_s27 }
 0x36f   : > { %p1398_p2 = pnand %p1397_p13, %p1748_p0  ;;  %p1403_p11 = por %p1402_p5, %p1401_p10 }
 0x371   : > { %p1399_p6 = pneg %p1398_p2 }
 0x373   : > { %p1404_p8 = pnand %p1403_p11, %p1399_p6 }
 0x375   : > { %1407 = shalt.err (!%p1404_p8)
}
 0x376   : > { %1033 = dma.vmem_to_hbm [thread:$0]  (%p1748_p0), %s796_s3, 640, %s798_s20, %s776_s22  }
 0x377   : > { %s781_s21 = scalar_lea.sflag [#allocation17], %s1830_s8  ;;  %s1422_s10 = sshra.s32 %s811_s23, 4  ;;  %s1423_s10 = int_to_ptr.hbm [resolvable:$true] %s1422_s10 }
 0x378   : > { %s1424_s28 = scalar_lea.hbm %s1423_s10, 1  ;;  %s1428_s7 = scalar_lea.hbm %s2034_s11, 2 }
 0x379   : > { %p1425_p4 = scmp.ne.s32.totalorder %s1423_s10, %s1424_s28  ;;  %p1429_p12 = scmp.lt.s32.totalorder %s1423_s10, %s2034_s11 }
 0x37a   : > { %p1430_p13 = scmp.lt.s32.totalorder %s1428_s7, %s1424_s28 }
 0x37b   : > { %p1426_p3 = pnand %p1425_p4, %p1799_p7 }
 0x37c   : > { %p1431_p2 = por %p1430_p13, %p1429_p12 }
 0x37d   : > { %p1427_p1 = pneg %p1426_p3 }
 0x37f   : > { %p1432_p0 = pnand %p1431_p2, %p1427_p1 }
 0x381   : > { %1435 = shalt.err (!%p1432_p0)
}
 0x382   : > { %1034 = dma.vmem_to_hbm [thread:$0]  (%p1799_p7), %s1894_s1, 16, %s811_s23, %s781_s21  }
 0x383 PF: > { %s2037_s20 = sld [smem:[#allocation33_spill]]  ;;  %p1073_p6 = scmp.ge.s32.totalorder %s1552_s26, 2 }
 0x384   : > { %s822_s9 = sand.u32 1, %s1524_s19  }
 0x385   : > { %s823_s8 = scalar_lea.sflag [#allocation6], %s822_s9 }
 0x389   : > { %p2038_p10 = scmp.ne.s32.totalorder %s2037_s20, 0 }
 0x38b   : > { %p1058_p5 = pnand %p1073_p6, %p2038_p10 }
 0x38d   : > { %p1059_p11 = pneg %p1058_p5 }
 0x38f   : > { %1503 = dma.done.wait (%p1059_p11), %s823_s8, 640  }
 0x390   : > { %1505 = vsyncadd (%p1059_p11), %s823_s8, 4294966656  ;;  %s832_s30 = sand.u32 1, %s1512_s17   ;;  %p1061_p8 = pnand %p1073_p6, %p1805_p9 }
 0x391   : > { %s833_s15 = scalar_lea.sflag [#allocation17], %s832_s30 }
 0x392   : > { %p1062_p4 = pneg %p1061_p8 }
 0x394   : > { %1507 = dma.done.wait (%p1062_p4), %s833_s15, 16  }
 0x395   : > { %1509 = vsyncadd (%p1062_p4), %s833_s15, 4294967280  ;;  %s43_s26 = sadd.s32 1, %s1552_s26   ;;  %s2040_s1 = sld [smem:[#allocation35_spill]] }
 0x396   : > { %p40_p7 = scmp.ge.s32.totalorder %s43_s26, 6   ;;  %s2041_s19 = sld [smem:[#allocation26_spill]] }
 0x397   : > { %s2042_s20 = sld [smem:[#allocation27_spill]]  ;;  %s2048_s17 = smov %s1516_s18 }
 0x398   : > { %s2043_s21 = sld [smem:[#allocation34_spill]]  ;;  %s2049_s18 = smov %s1520_s0 }
 0x399   : > { %s2044_s22 = sld [smem:[#allocation29_spill]]  ;;  %42 = sbr.rel (!%p40_p7) target bundleno = 30 (0x1e), region = 151 }
 0x39a   : > { %s2045_s23 = sld [smem:[#allocation30_spill]] }
 0x39b   : > { %s2046_s24 = sld [smem:[#allocation31_spill]]  ;;  %s2050_s0 = smov %s2040_s1 }
 0x39c   : > { %s2047_s25 = sld [smem:[#allocation32_spill]] }
 0x39e   :  { %838 = vsyncpa [#allocation5], 1 }
 0x39f   :  { %840 = vsyncpa [#allocation5 + $0x1], 1 }
 0x3a0   :  { %841 = vsyncpa [#allocation8], 1 }
 0x3a1   :  { %843 = vsyncpa [#allocation8 + $0x1], 1 }
 0x3a2   :  { %844 = vsyncpa [#allocation11], 1 }
 0x3a3   :  { %845 = vsyncpa [#allocation14], 1 }
 0x3a4   :  { %846 = vsyncpa [#allocation6], 1 }
 0x3a5   :  { %848 = vsyncpa [#allocation6 + $0x1], 1 }
 0x3a6   :  { %849 = vsyncpa [#allocation17], 1 }
 0x3a7   :  { %851 = vsyncpa [#allocation17 + $0x1], 1 }

// kernel: tpu_custom_call.1
= control target key start
LH: loop header
LB: loop body
LE: loop exit
PB: predicated region body
PF: predicated region fallthrough
CT: control target
= control target key end

     0   :  { %s1554_s16 = smov [#allocation3]   ;;  %s1966_s0 = inlined_call_operand.hbm [shape: s32[2], index: 0, kind: input, shape index: {}]   ;;  %s1967_s1 = inlined_call_operand.hbm [shape: f32[2,16,32], index: 1, kind: input, shape index: {}]   ;;  %s1968_s2 = inlined_call_operand.hbm [shape: f32[2,1,128], index: 2, kind: input, shape index: {}]   ;;  %s1969_s3 = inlined_call_operand.hbm [shape: f32[32,128], index: 3, kind: input, shape index: {}]   ;;  %s1970_s4 = inlined_call_operand.hbm [shape: f32[1,128], index: 4, kind: input, shape index: {}]   ;;  %s1971_s5 = inlined_call_operand.hbm [shape: f32[128,256], index: 5, kind: input, shape index: {}]   ;;  %s1972_s6 = inlined_call_operand.vmem [shape: f32[1,256], index: 6, kind: input, shape index: {}]   ;;  %s1973_s7 = inlined_call_operand.hbm [shape: f32[128,256], index: 7, kind: input, shape index: {}]   ;;  %s1974_s8 = inlined_call_operand.vmem [shape: f32[1,256], index: 8, kind: input, shape index: {}]   ;;  %s1975_s9 = inlined_call_operand.hbm [shape: f32[2,16,640], index: 9, kind: output, shape index: {0}]   ;;  %s1976_s10 = inlined_call_operand.hbm [shape: f32[2,1,128], index: 10, kind: output, shape index: {1}]  }
   0x1   :  { %1990 = sst [smem:[#allocation37_spill]] %s1967_s1  ;;  %s17_s15 = sshll.u32 %s1966_s0, 4  ;;  %s18_s15 = int_to_ptr.hbm [resolvable:$true] %s17_s15 }
   0x2   :  { %1991 = sst [smem:[#allocation38_spill]] %s1968_s2 }
   0x3   :  { %1992 = sst [smem:[#allocation39_spill]] %s1969_s3 }
   0x4   :  { %1993 = sst [smem:[#allocation40_spill]] %s1970_s4 }
   0x5   :  { %1994 = sst [smem:[#allocation41_spill]] %s1971_s5 }
   0x6   :  { %1995 = sst [smem:[#allocation42_spill]] %s1972_s6 }
   0x7   :  { %1996 = sst [smem:[#allocation43_spill]] %s1973_s7 }
   0x8   :  { %1997 = sst [smem:[#allocation44_spill]] %s1974_s8 }
   0x9   :  { %1998 = sst [smem:[#allocation45_spill]] %s1975_s9 }
   0xa   :  { %1999 = sst [smem:[#allocation46_spill]] %s1976_s10 }
   0xb   :  { %20 = dma.hbm_to_smem %s18_s15, 16, %s1554_s16, [#allocation2] }
   0xc   :  { %1480 = dma.done.wait [#allocation2], 16 }
   0xd   :  { %1481 = vsyncadd [#allocation2], 4294967280 }
   0xe   :  { %23 = sfence }
   0xf   :  { %24 = vsyncpa [#allocation5], 0 }
  0x10   :  { %26 = vsyncpa [#allocation5 + $0x1], 0 }
  0x11   :  { %27 = vsyncpa [#allocation8], 0 }
  0x12   :  { %29 = vsyncpa [#allocation8 + $0x1], 0 }
  0x13   :  { %30 = vsyncpa [#allocation11], 0 }
  0x14   :  { %31 = vsyncpa [#allocation14], 0 }
  0x15   :  { %32 = vsyncpa [#allocation6], 0 }
  0x16   :  { %34 = vsyncpa [#allocation6 + $0x1], 0 }
  0x17   :  { %35 = vsyncpa [#allocation17], 0 }
  0x18   :  { %37 = vsyncpa [#allocation17 + $0x1], 0  ;;  %s1624_s17 = smov 0   ;;  %s1626_s18 = smov 0  }
  0x19   :  { %s1628_s0 = smov 0   ;;  %s1630_s19 = smov 0  }
  0x1a   :  { %s1632_s20 = smov 0   ;;  %s1634_s21 = smov 0  }
  0x1b   :  { %s1636_s22 = smov 0   ;;  %s1638_s23 = smov 0  }
  0x1c   :  { %s1640_s24 = smov 0   ;;  %s1642_s25 = smov 0  }
  0x1d   :  { %s1644_s26 = smov 0  }
  0x1e LB: > { %2000 = sst [smem:[#allocation26_spill]] %s1528_s20  ;;  %s1680_s27 = sadd.s32 4294967295, %s1552_s26   ;;  %s1552_s26 = sphi %s1644_s26, %s43_s26   ;;  %s1548_s25 = sphi %s1642_s25, %s2047_s25   ;;  %s1544_s24 = sphi %s1640_s24, %s2046_s24   ;;  %s1540_s23 = sphi %s1638_s23, %s2045_s23   ;;  %s1536_s22 = sphi %s1636_s22, %s2044_s22   ;;  %s1532_s21 = sphi %s1634_s21, %s2043_s21   ;;  %s1528_s20 = sphi %s1632_s20, %s2042_s20   ;;  %s1524_s19 = sphi %s1630_s19, %s2041_s19   ;;  %s1520_s0 = sphi %s1628_s0, %s2050_s0   ;;  %s1516_s18 = sphi %s1626_s18, %s2049_s18   ;;  %s1512_s17 = sphi %s1624_s17, %s2048_s17  }
  0x1f   : > { %2001 = sst [smem:[#allocation27_spill]] %s1532_s21  ;;  %p984_p0 = scmp.ge.s32.totalorder %s1552_s26, 1 }
  0x20   : > { %2002 = sst [smem:[#allocation28_spill]] %s1540_s23  ;;  %p78_p1 = scmp.eq.s32.totalorder %s1680_s27, 0 }
  0x21   : > { %2003 = sst [smem:[#allocation29_spill]] %s1544_s24  ;;  %p294_p2 = scmp.lt.s32.totalorder %s1552_s26, 5 }
  0x22   : > { %2004 = sst [smem:[#allocation30_spill]] %s1548_s25  ;;  %s1555_s12 = smov [#allocation9]  }
  0x23   : > { %s2005_s3 = sld [smem:[#allocation39_spill]]  ;;  %p1688_p3 = pnand %p984_p0, %p294_p2 }
  0x24   : > { %s307_s13 = sshll.u32 %s1555_s12, 4  ;;  %s2008_s4 = sld [smem:[#allocation40_spill]]  ;;  %s308_s13 = int_to_ptr.vmem [resolvable:$true] %s307_s13 }
  0x25   : > { %p1037_p4 = pneg %p1688_p3  ;;  %s1556_s29 = smov 128  }
  0x26   : > { %s1558_s9 = smov [#allocation10]   ;;  %s2009_s5 = sld [smem:[#allocation41_spill]] }
  0x27   : > { %p1696_p5 = pnand %p1037_p4, %p78_p1  ;;  %s322_s12 = sshll.u32 %s1558_s9, 4  ;;  %s323_s12 = int_to_ptr.vmem [resolvable:$true] %s322_s12 }
  0x28   : > { %s1559_s15 = smov [#allocation12]   ;;  %s2010_s7 = sld [smem:[#allocation43_spill]] }
  0x29   : > { %s305_s30 = sshll.u32 %s2005_s3, 4  ;;  %s1557_s3 = smov 8   ;;  %s306_s30 = int_to_ptr.hbm [resolvable:$true] %s305_s30 }
  0x2a   : > { %s320_s28 = sshll.u32 %s2008_s4, 4  ;;  %s333_s16 = sshll.u32 %s1559_s15, 4  ;;  %s321_s28 = int_to_ptr.hbm [resolvable:$true] %s320_s28  ;;  %s334_s16 = int_to_ptr.vmem [resolvable:$true] %s333_s16 }
  0x2b   : > { %1040 = dma.hbm_to_vmem [thread:$0]  (!%p1696_p5), %s306_s30, 512, %s308_s13, [#allocation8], %s1556_s29, %s1556_s29, %s1557_s3  }
  0x2c   : > { %s331_s8 = sshll.u32 %s2009_s5, 4  ;;  %s1560_s10 = smov 256   ;;  %s332_s8 = int_to_ptr.hbm [resolvable:$true] %s331_s8 }
  0x2d   : > { %1043 = dma.hbm_to_vmem [thread:$0]  (!%p1696_p5), %s321_s28, 16, %s323_s12, [#allocation11]  }
  0x2e   : > { %s348_s30 = sshll.u32 %s2010_s7, 4  ;;  %s1561_s23 = smov 16   ;;  %s349_s30 = int_to_ptr.hbm [resolvable:$true] %s348_s30 }
  0x2f   : > { %1046 = dma.hbm_to_vmem [thread:$0]  (!%p1696_p5), %s332_s8, 4096, %s334_s16, [#allocation11], %s1560_s10, %s1560_s10, %s1561_s23  }
  0x30   : > { %s1562_s13 = smov [#allocation13]   ;;  %s983_s29 = sadd.s32 4294967294, %s1552_s26  }
  0x31   : > { %s350_s28 = sshll.u32 %s1562_s13, 4  ;;  %s52_s12 = sadd.s32 1, %s1544_s24  ;;  %s351_s28 = int_to_ptr.vmem [resolvable:$true] %s350_s28 }
  0x32   : > { %1049 = dma.hbm_to_vmem [thread:$0]  (!%p1696_p5), %s349_s30, 4096, %s351_s28, [#allocation14], %s1560_s10, %s1560_s10, %s1561_s23  }
  0x33   : > { %p53_p6 = scmp.ge.s32.totalorder %s52_s12, 2  ;;  %s55_s15 = sadd.s32 1, %s1548_s25 }
  0x34   : > { %s64_s3 = sadd.s32 1, %s1532_s21  ;;  %p71_p7 = scmp.ne.s32.totalorder %s1532_s21, %s1528_s20 }
  0x35   : > { %s2052_s12 = smov (%p53_p6, %s52_s12), 0  ;;  %s2054_s15 = smov (!%p53_p6, %s55_s15), %s1548_s25 }
  0x36   : > { %2011 = sst [smem:[#allocation31_spill]] %s2052_s12  ;;  %s60_s8 = ssub.s32 %s1544_s24, %s2052_s12 }
  0x37   : > { %p72_p8 = scmp.eq.s32.totalorder %s1552_s26, 0  ;;  %p57_p9 = scmp.ge.s32.totalorder %s2054_s15, 2 }
  0x38   : > { %p77_p10 = scmp.ne.s32.totalorder %s1528_s20, %s1524_s19  ;;  %p1984_p12 = scmp.eq.s32.totalorder %s1680_s27, 3 }
  0x39   : > { %p1733_p11 = por %p72_p8, %p71_p7  ;;  %s2056_s15 = smov (%p57_p9, %s2054_s15), 0 }
  0x3a   : > { %2013 = sst [smem:[#allocation32_spill]] %s2056_s15  ;;  %p1742_p13 = por %p78_p1, %p77_p10 }
  0x3b   : > { %p1748_p0 = por %p1984_p12, %p71_p7  ;;  %s59_s30 = ssub.s32 %s1548_s25, %s2056_s15 }
  0x3c   : > { %p1754_p2 = scmp.eq.s32.totalorder %s983_s29, 3  ;;  %s61_s23 = sor.u32 %s60_s8, %s59_s30 }
  0x3d   : > { %p88_p4 = scmp.eq.s32.totalorder %s59_s30, 0  ;;  %p62_p5 = scmp.eq.s32.totalorder %s61_s23, 0 }
  0x3e   : > { %p1760_p6 = por %p1754_p2, %p77_p10  ;;  %p1985_p7 = scmp.lt.s32.totalorder %s1552_s26, 4 }
  0x3f   : > { %s367_s28 = sand.u32 1, %s1532_s21   ;;  %s991_s5 = sshll.u32 %s1548_s25, 1 }
  0x40   : > { %s2017_s13 = scalar_select %p1760_p6, 1, 0 }
  0x41   : > { %s1767_s4 = scalar_select %p62_p5, %s1532_s21, %s64_s3  }
  0x42   : > { %2018 = sst [smem:[#allocation33_spill]] %s2017_s13  ;;  %s990_s29 = sshll.u32 %s367_s28, 3 }
  0x43   : > { %2019 = sst [smem:[#allocation34_spill]] %s1767_s4  ;;  %s375_s8 = sadd.s32 %s1544_s24, %s991_s5 }
  0x44   : > { %s371_s23 = scalar_lea.vmem [#allocation4], %s990_s29  ;;  %s992_s15 = sshll.u32 %s375_s8, 3 }
  0x45   : > { %s381_s7 = sshll.u32 %s371_s23, 4  ;;  %s2020_s1 = sld [smem:[#allocation37_spill]]  ;;  %s382_s7 = int_to_ptr.vmem [resolvable:$true] %s381_s7 }
  0x46   : > { %p1051_p9 = pnand %p1985_p7, %p1733_p11  ;;  %s368_s5 = scalar_lea.sflag [#allocation5], %s367_s28 }
  0x47   : > { %s90_s29 = sadd.s32 1, %s1520_s0  ;;  %p97_p10 = scmp.ne.s32.totalorder %s1520_s0, %s1516_s18 }
  0x48   : > { %s1781_s23 = scalar_select %p88_p4, %s1520_s0, %s90_s29  }
  0x49   : > { %p103_p5 = scmp.ne.s32.totalorder %s1516_s18, %s1512_s17  ;;  %s388_s8 = sand.u32 1, %s1552_s26  }
  0x4a   : > { %2021 = sst [smem:[#allocation35_spill]] %s1781_s23  ;;  %s390_s24 = sand.u32 1, %s1520_s0  }
  0x4b   : > { %s377_s3 = scalar_lea.hbm %s2020_s1, %s992_s15  ;;  %p99_p12 = por %p97_p10, %p72_p8 }
  0x4c   : > { %s379_s4 = sshll.u32 %s377_s3, 4  ;;  %p1793_p6 = por %p103_p5, %p78_p1  ;;  %s380_s4 = int_to_ptr.hbm [resolvable:$true] %s379_s4 }
  0x4d   : > { %1053 = dma.hbm_to_vmem [thread:$0]  (!%p1051_p9), %s380_s4, 128, %s382_s7, %s368_s5  }
  0x4e   : > { %p2023_p11 = scmp.eq.s32.totalorder %s1680_s27, 3  ;;  %p1805_p9 = por %p1754_p2, %p103_p5 }
  0x4f   : > { %s2027_s2 = sld [smem:[#allocation38_spill]]  ;;  %s391_s13 = scalar_lea.vmem [#allocation7], %s390_s24 }
  0x50   : > { %p1799_p7 = por %p2023_p11, %p97_p10  ;;  %s398_s28 = sshll.u32 %s391_s13, 4  ;;  %s399_s28 = int_to_ptr.vmem [resolvable:$true] %s398_s28 }
  0x51   : > { %s2025_s4 = scalar_select %p1805_p9, 1, 0 }
  0x52   : > { %p2028_p8 = scmp.lt.s32.totalorder %s1552_s26, 4  ;;  %s389_s5 = scalar_lea.sflag [#allocation8], %s388_s8 }
  0x53   : > { %2026 = sst [smem:[#allocation36_spill]] %s2025_s4  ;;  %407 = sbr.rel (%p1688_p3) target bundleno = 899 (0x383), region = 52 }
  0x54   : > { %p1054_p4 = pnand %p2028_p8, %p99_p12  ;;  %s1818_s10 = sand.u32 (!%p1688_p3), 1, %s1528_s20  }
  0x55   : > { %s394_s30 = scalar_lea.hbm %s2027_s2, %s1548_s25  ;;  %s994_s29 = sshll.u32 (!%p1688_p3), %s1818_s10, 3 }
  0x56   : > { %s396_s3 = sshll.u32 %s394_s30, 4  ;;  %s410_s7 = scalar_lea.sflag (!%p1688_p3), [#allocation5], %s1818_s10  ;;  %s397_s3 = int_to_ptr.hbm [resolvable:$true] %s396_s3 }
  0x57   : > { %1056 = dma.hbm_to_vmem [thread:$0]  (!%p1054_p4), %s397_s3, 16, %s399_s28, %s389_s5  }
  0x58   : > { %s1822_s24 = scalar_lea.vmem [#allocation4], %s994_s29 }
  0x59   : > { %1483 = dma.done.wait (%p1742_p13), %s410_s7, 128  }
  0x5a   : > { %1485 = vsyncadd (%p1742_p13), %s410_s7, 4294967168  ;;  %s419_s11 = sand.u32 1, %s1680_s27   ;;  %s1830_s8 = sand.u32 1, %s1516_s18  }
  0x5b   : > { %s420_s14 = scalar_lea.sflag [#allocation8], %s419_s11  ;;  %s422_s30 = scalar_lea.vmem [#allocation7], %s1830_s8 }
  0x5c   : > { %1487 = dma.done.wait (%p1793_p6), %s420_s14, 16  }
  0x5d   : > { %1489 = vsyncadd (%p1793_p6), %s420_s14, 4294967280 }
  0x5e   : > { %1491 = dma.done.wait (%p78_p1), [#allocation8], 512  }
  0x5f   : > { %1493 = vsyncadd (%p78_p1), [#allocation8], 4294966784 }
  0x60   : > { %1495 = dma.done.wait (%p78_p1), [#allocation11], 4112  }
  0x61   : > { %1497 = vsyncadd (%p78_p1), [#allocation11], 4294963184 }
  0x62   : > { %1499 = dma.done.wait (%p78_p1), [#allocation14], 4096  }
  0x63   : > { %1501 = vsyncadd (%p78_p1), [#allocation14], 4294963200  ;;  %s1008_s16 = smul.u32 40, %s1818_s10  ;;  %s1853_s13 = scalar_lea.vmem [#allocation16], %s1830_s8 }
  0x64   : > { %p999_p3 = scmp.ne.s32.totalorder %s1536_s22, 0 }
  0x65   : > { %s1850_s12 = scalar_lea.vmem [#allocation15], %s1008_s16 }
  0x66   : > { %489 = sbr.rel (%p999_p3) target bundleno = 109 (0x6d), region = 80 }
  0x6b   : > { %v1563_v0 = vmov 0.0  }
  0x6c   : > { %490 = vst [vmem:[%s1853_s13] sm:$0x1] %v1563_v0 }
  0x6d PF: > { %v495_v1 = vld [vmem:[#allocation9 + $0x18] sm:$0xff]  ;;  %v494_v2 = vld [vmem:[#allocation9 + $0x10] sm:$0xff]  ;;  %v493_v3 = vld [vmem:[#allocation9 + $0x8] sm:$0xff]  ;;  %vm500_vm0 = vcmask 261120   ;;  %s2029_s6 = sld [smem:[#allocation42_spill]]  ;;  %s1002_s11 = sshll.u32 %s1536_s22, 3 }
  0x6e   : > { %516 = vmatpush.msra.mxu0 %v495_v1  ;;  %v556_v4 = vld [vmem:[#allocation12 + $0xf0] sm:$0xff]  ;;  %v557_v5 = vld [vmem:[#allocation12 + $0xf8] sm:$0xff]  ;;  %v554_v6 = vld [vmem:[#allocation12 + $0xe0] sm:$0xff]  ;;  %s2030_s29 = sld [smem:[#allocation44_spill]]  ;;  %p1004_p1 = scmp.ne.s32.totalorder %s1536_s22, 1 }
  0x6f   : > { %564 = vmatpush.msra.mxu1 %v556_v4  ;;  %v555_v7 = vld [vmem:[#allocation12 + $0xe8] sm:$0xff]  ;;  %584 = vmatpush.msra.mxu2 %v557_v5  ;;  %v552_v8 = vld [vmem:[#allocation12 + $0xd0] sm:$0xff]  ;;  %v492_v9 = vld [vmem:[#allocation9] sm:$0xff]  ;;  %s2031_s7 = sld [smem:[#allocation28_spill]] }
  0x70   : > { %517 = vmatpush.msra.mxu0 %v494_v2  ;;  %v553_v10 = vld [vmem:[#allocation12 + $0xd8] sm:$0xff]  ;;  %v550_v12 = vld [vmem:[#allocation12 + $0xc0] sm:$0xff]  ;;  %v551_v13 = vld [vmem:[#allocation12 + $0xc8] sm:$0xff] }
  0x71   : > { %565 = vmatpush.msra.mxu1 %v554_v6  ;;  %v491_v11 = vld [vmem:[%s1822_s24] sm:$0xff]  ;;  %585 = vmatpush.msra.mxu2 %v555_v7  ;;  %v546_v16 = vld [vmem:[#allocation12 + $0xa0] sm:$0xff]  ;;  %v1176_v0 = vld [vmem:[#allocation10] ss:$0 sm:$0xff] }
  0x72   : > { %518 = vmatpush.msra.mxu0 %v493_v3  ;;  %v548_v14 = vld [vmem:[#allocation12 + $0xb0] sm:$0xff]  ;;  %v549_v15 = vld [vmem:[#allocation12 + $0xb8] sm:$0xff]  ;;  %v547_v17 = vld [vmem:[#allocation12 + $0xa8] sm:$0xff] }
  0x73   : > { %566 = vmatpush.msra.mxu1 %v552_v8  ;;  %586 = vmatpush.msra.mxu2 %v553_v10  ;;  %v544_v18 = vld [vmem:[#allocation12 + $0x90] sm:$0xff]  ;;  %v545_v19 = vld [vmem:[#allocation12 + $0x98] sm:$0xff]  ;;  %v542_v20 = vld [vmem:[#allocation12 + $0x80] sm:$0xff] }
  0x74   : > { %519 = vmatpush.msra.mxu0 %v492_v9  ;;  %v543_v21 = vld [vmem:[#allocation12 + $0x88] sm:$0xff]  ;;  %v540_v22 = vld [vmem:[#allocation12 + $0x70] sm:$0xff]  ;;  %v541_v23 = vld [vmem:[#allocation12 + $0x78] sm:$0xff] }
  0x75   : > { %1000 = vmatmul.msk.f32.vlgmr.msra.gmra.mxu0 %vm500_vm0, %v491_v11  ;;  %567 = vmatpush.msra.mxu1 %v550_v12  ;;  %v538_v24 = vld [vmem:[#allocation12 + $0x60] sm:$0xff]  ;;  %v539_v25 = vld [vmem:[#allocation12 + $0x68] sm:$0xff]  ;;  %v536_v26 = vld [vmem:[#allocation12 + $0x50] sm:$0xff]  ;;  %s1868_s24 = sld [smem:[#allocation3 + %s2031_s7]] }
  0x76   : > { %587 = vmatpush.msra.mxu2 %v551_v13  ;;  %v537_v27 = vld [vmem:[#allocation12 + $0x58] sm:$0xff]  ;;  %v534_v28 = vld [vmem:[#allocation12 + $0x40] sm:$0xff]  ;;  %v535_v29 = vld [vmem:[#allocation12 + $0x48] sm:$0xff] }
  0x77   : > { %568 = vmatpush.msra.mxu1 %v548_v14  ;;  %v532_v30 = vld [vmem:[#allocation12 + $0x30] sm:$0xff]  ;;  %v533_v31 = vld [vmem:[#allocation12 + $0x38] sm:$0xff]  ;;  %v530_v32 = vld [vmem:[#allocation12 + $0x20] sm:$0xff] }
  0x78   : > { %588 = vmatpush.msra.mxu2 %v549_v15  ;;  %v531_v33 = vld [vmem:[#allocation12 + $0x28] sm:$0xff]  ;;  %v528_v34 = vld [vmem:[#allocation12 + $0x10] sm:$0xff]  ;;  %v529_v35 = vld [vmem:[#allocation12 + $0x18] sm:$0xff] }
  0x79   : > { %569 = vmatpush.msra.mxu1 %v546_v16  ;;  %v526_v36 = vld [vmem:[#allocation12] sm:$0xff]  ;;  %v527_v37 = vld [vmem:[#allocation12 + $0x8] sm:$0xff]  ;;  %v636_v38 = vld [vmem:[#allocation13 + $0xf0] sm:$0xff] }
  0x7a   : > { %589 = vmatpush.msra.mxu2 %v547_v17  ;;  %v637_v39 = vld [vmem:[#allocation13 + $0xf8] sm:$0xff]  ;;  %v634_v40 = vld [vmem:[#allocation13 + $0xe0] sm:$0xff]  ;;  %644 = vmatpush.msra.mxu3 %v636_v38  ;;  %v635_v41 = vld [vmem:[#allocation13 + $0xe8] sm:$0xff] }
  0x7b   : > { %570 = vmatpush.msra.mxu1 %v544_v18  ;;  %664 = vmatpush.msrb.mxu0 %v637_v39  ;;  %v632_v42 = vld [vmem:[#allocation13 + $0xd0] sm:$0xff]  ;;  %v633_v43 = vld [vmem:[#allocation13 + $0xd8] sm:$0xff]  ;;  %v630_v44 = vld [vmem:[#allocation13 + $0xc0] sm:$0xff]  ;;  %v1564_v18 = vmov 0   ;;  %p752_p12 = scmp.gt.s32.totalorder (!%p1004_p1), %s1868_s24, 1 }
  0x7c   : > { %590 = vmatpush.msra.mxu2 %v545_v19  ;;  %645 = vmatpush.msra.mxu3 %v634_v40  ;;  %v631_v45 = vld [vmem:[#allocation13 + $0xc8] sm:$0xff]  ;;  %v628_v46 = vld [vmem:[#allocation13 + $0xb0] sm:$0xff]  ;;  %v629_v47 = vld [vmem:[#allocation13 + $0xb8] sm:$0xff] }
  0x7d   : > { %571 = vmatpush.msra.mxu1 %v542_v20  ;;  %665 = vmatpush.msrb.mxu0 %v635_v41  ;;  %v626_v48 = vld [vmem:[#allocation13 + $0xa0] sm:$0xff]  ;;  %v627_v49 = vld [vmem:[#allocation13 + $0xa8] sm:$0xff]  ;;  %v624_v50 = vld [vmem:[#allocation13 + $0x90] sm:$0xff] }
  0x7e   : > { %591 = vmatpush.msra.mxu2 %v543_v21  ;;  %646 = vmatpush.msra.mxu3 %v632_v42  ;;  %v625_v51 = vld [vmem:[#allocation13 + $0x98] sm:$0xff]  ;;  %v622_v52 = vld [vmem:[#allocation13 + $0x80] sm:$0xff]  ;;  %v623_v53 = vld [vmem:[#allocation13 + $0x88] sm:$0xff] }
  0x7f   : > { %572 = vmatpush.msra.mxu1 %v540_v22  ;;  %666 = vmatpush.msrb.mxu0 %v633_v43  ;;  %v620_v54 = vld [vmem:[#allocation13 + $0x70] sm:$0xff]  ;;  %v621_v55 = vld [vmem:[#allocation13 + $0x78] sm:$0xff]  ;;  %v618_v56 = vld [vmem:[#allocation13 + $0x60] sm:$0xff] }
  0x80   : > { %592 = vmatpush.msra.mxu2 %v541_v23  ;;  %647 = vmatpush.msra.mxu3 %v630_v44  ;;  %v619_v57 = vld [vmem:[#allocation13 + $0x68] sm:$0xff]  ;;  %v616_v58 = vld [vmem:[#allocation13 + $0x50] sm:$0xff]  ;;  %v617_v59 = vld [vmem:[#allocation13 + $0x58] sm:$0xff]  ;;  %v724_v44 = vlaneseq }
  0x81   : > { %573 = vmatpush.msra.mxu1 %v538_v24  ;;  %667 = vmatpush.msrb.mxu0 %v631_v45  ;;  %v614_v60 = vld [vmem:[#allocation13 + $0x40] sm:$0xff]  ;;  %v615_v61 = vld [vmem:[#allocation13 + $0x48] sm:$0xff]  ;;  %v612_v62 = vld [vmem:[#allocation13 + $0x30] sm:$0xff] }
  0x82   : > { %593 = vmatpush.msra.mxu2 %v539_v25  ;;  %648 = vmatpush.msra.mxu3 %v628_v46  ;;  %v613_v63 = vld [vmem:[#allocation13 + $0x38] sm:$0xff]  ;;  %v610_v4 = vld [vmem:[#allocation13 + $0x20] sm:$0xff]  ;;  %v611_v5 = vld [vmem:[#allocation13 + $0x28] sm:$0xff]  ;;  %v725_v46 = vshrl.u32 %v724_v44, 7 }
  0x83   : > { %574 = vmatpush.msra.mxu1 %v536_v26  ;;  %668 = vmatpush.msrb.mxu0 %v629_v47  ;;  %v608_v6 = vld [vmem:[#allocation13 + $0x10] sm:$0xff]  ;;  %v609_v7 = vld [vmem:[#allocation13 + $0x18] sm:$0xff]  ;;  %v606_v8 = vld [vmem:[#allocation13] sm:$0xff]  ;;  %v726_v47 = vstv %s1002_s11 }
  0x84   : > { %594 = vmatpush.msra.mxu2 %v537_v27  ;;  %649 = vmatpush.msra.mxu3 %v626_v48  ;;  %v607_v9 = vld [vmem:[#allocation13 + $0x8] sm:$0xff]  ;;  %v558_v10 = vld [vmem:[%s2029_s6] sm:$0x3]  ;;  %v727_v48 = vadd.s32 %v726_v47, %v725_v46 }
  0x85   : > { %575 = vmatpush.msra.mxu1 %v534_v28  ;;  %669 = vmatpush.msrb.mxu0 %v627_v49  ;;  %v560_v11 = vperm.slane %v558_v10, 0  ;;  %v561_v15 = vperm.slane %v558_v10, 1  ;;  %v638_v19 = vld [vmem:[%s2030_s29] sm:$0x3] }
  0x86   : > { %595 = vmatpush.msra.mxu2 %v535_v29  ;;  %650 = vmatpush.msra.mxu3 %v624_v50  ;;  %v641_v20 = vperm.slane %v638_v19, 1  ;;  %v640_v24 = vperm.slane %v638_v19, 0  ;;  %v728_v50 = vstv %s1868_s24 }
  0x87   : > { %576 = vmatpush.msra.mxu1 %v532_v30  ;;  %670 = vmatpush.msrb.mxu0 %v625_v51  ;;  %v1177_v51 = vld [vmem:[%s422_s30] ss:$0 sm:$0xff]  ;;  %vm729_vm5 = vcmp.lt.s32.totalorder %v727_v48, %v728_v50 }
  0x88   : > { %596 = vmatpush.msra.mxu2 %v533_v31  ;;  %651 = vmatpush.msra.mxu3 %v622_v52 }
  0x89   : > { %577 = vmatpush.msra.mxu1 %v530_v32  ;;  %671 = vmatpush.msrb.mxu0 %v623_v53 }
  0x8a   : > { %597 = vmatpush.msra.mxu2 %v531_v33  ;;  %652 = vmatpush.msra.mxu3 %v620_v54 }
  0x8b   : > { %578 = vmatpush.msra.mxu1 %v528_v34  ;;  %672 = vmatpush.msrb.mxu0 %v621_v55 }
  0x8c   : > { %598 = vmatpush.msra.mxu2 %v529_v35  ;;  %653 = vmatpush.msra.mxu3 %v618_v56  ;;  %v1565_v56 = vmov 0.0  }
  0x8d   : > { %579 = vmatpush.msra.mxu1 %v526_v36  ;;  %673 = vmatpush.msrb.mxu0 %v619_v57  ;;  %v1003_v57 = vsel %vm729_vm5, 1.0, %v1565_v56 }
  0x8e   : > { %599 = vmatpush.msra.mxu2 %v527_v37  ;;  %654 = vmatpush.msra.mxu3 %v616_v58 }
  0x8f   : > { %674 = vmatpush.msrb.mxu0 %v617_v59  ;;  %1174 = vset.pattern.permute.xlu1 %v1564_v18 }
  0x90   : > { %655 = vmatpush.msra.mxu3 %v614_v60  ;;  %1175 = vset.pattern.permute.xlu0 %v1564_v18 }
  0x91   : > { %675 = vmatpush.msrb.mxu0 %v615_v61 }
  0x92   : > { %656 = vmatpush.msra.mxu3 %v612_v62 }
  0x93   : > { %676 = vmatpush.msrb.mxu0 %v613_v63 }
  0x94   : > { %657 = vmatpush.msra.mxu3 %v610_v4 }
  0x95   : > { %677 = vmatpush.msrb.mxu0 %v611_v5 }
  0x96   : > { %658 = vmatpush.msra.mxu3 %v608_v6 }
  0x97   : > { %678 = vmatpush.msrb.mxu0 %v609_v7 }
  0x98   : > { %659 = vmatpush.msra.mxu3 %v606_v8 }
  0x99   : > { %679 = vmatpush.msrb.mxu0 %v607_v9 }
  0xf2   : > { %v521_v1 = vpop.f32.mrf.mxu0 }
  0xf3   : > { %v522_v2 = vadd.f32 %v1176_v0, %v521_v1  ;;  %v732_v1 = vld [vmem:[%s1853_s13] sm:$0x1] }
  0xf5   : > { %v524_v3 = vmax.f32 %v522_v2, 0.0 }
  0xf7   : > { %525 = vst [vmem:[%s1850_s12] sm:$0xff] %v524_v3  ;;  %580 = vmatmul.f32.vlgmr.msra.gmra.mxu1 %v524_v3  ;;  %600 = vmatmul.f32.vlgmr.msra.gmra.mxu2 %v524_v3 }
 0x174   : > { %v581_v12 = vpop.f32.mrf.mxu1 }
 0x175   : > { %v582_v13 = vadd.f32 %v581_v12, %v560_v11 }
 0x177   : > { %v604_v14 = vmax.f32 %v582_v13, 0.0 }
 0x179   : > { %660 = vmatmul.f32.vlgmr.msra.gmra.mxu3 %v604_v14  ;;  %680 = vmatmul.f32.vlgmr.msrb.gmra.mxu0 %v604_v14 }
 0x17a   : > { %v601_v16 = vpop.f32.mrf.mxu2 }
 0x17b   : > { %v602_v17 = vadd.f32 %v601_v16, %v561_v15 }
 0x17d   : > { %605 = vst [vmem:[%s1850_s12 + $0x8] sm:$0xff] %v602_v17 }
 0x1f6   : > { %v681_v21 = vpop.f32.mrf.mxu0 }
 0x1f7   : > { %v682_v22 = vadd.f32 %v681_v21, %v641_v20 }
 0x1f9   : > { %v1001_v23 = vmul.f32 -1.442695, %v682_v22 }
 0x1fb   : > { %1178 = vpow2.f32 %v1001_v23 }
 0x1fc   : > { %v661_v25 = vpop.f32.mrf.mxu3 }
 0x1fd   : > { %v662_v26 = vadd.f32 %v661_v25, %v640_v24 }
 0x1ff   : > { %v684_v27 = vmul.f32 2.0, %v662_v26 }
 0x201   : > { %v1179_v28 = vpop.eup %1178  ;;  %685 = vmax.xlane.f32.xlu0 %v684_v27 }
 0x202   : > { %v698_v29 = vadd.f32 1.0, %v1179_v28 }
 0x204   : > { %1180 = vrcp.f32 %v698_v29  ;;  %v710_v33 = vand.u32 2147483648, %v698_v29  ;;  %v708_v35 = vand.u32 2147483647, %v698_v29  ;;  %vm704_vm2 = vweird.f32 %v698_v29 }
 0x206   : > { %v711_v37 = vor.u32 1.1754944e-38, %v710_v33  ;;  %vm709_vm4 = vcmp.eq.f32.partialorder %v708_v35, 8.507059e+37 }
 0x20a   : > { %v1181_v30 = vpop.eup %1180 }
 0x20b   : > { %v700_v31 = vmul.f32 %v1181_v30, %v698_v29  ;;  %vm705_vm1 = vweird.f32 %v1181_v30 }
 0x20c   : > { %vm706_vm3 = vmor %vm704_vm2, %vm705_vm1 }
 0x20d   : > { %v701_v32 = vsub.f32 1.0, %v700_v31 }
 0x20f   : > { %v702_v34 = vmul.f32 %v1181_v30, %v701_v32 }
 0x211   : > { %v703_v36 = vadd.f32 %v1181_v30, %v702_v34 }
 0x213   : > { %v707_v38 = vsel %vm706_vm3, %v1181_v30, %v703_v36 }
 0x214   : > { %v712_v39 = vsel %vm709_vm4, %v711_v37, %v707_v38 }
 0x215   : > { %716 = vperm.xlu1 %1174, %v712_v39   ;;  %721 = vst [vmem:[%s1850_s12 + $0x20] sm:$0xff] %v712_v39 }
 0x274   : > { %v686_v40 = vpop.xlane.xlu0 %685 }
 0x275   : > { %v687_v41 = vsub.f32 %v684_v27, %v686_v40 }
 0x277   : > { %v688_v42 = vmul.f32 1.442695, %v687_v41 }
 0x279   : > { %1182 = vpow2.f32 %v688_v42 }
 0x27f   : > { %v1183_v43 = vpop.eup %1182 }
 0x280   : > { %690 = vadd.xlane.f32.xlu0 %v1183_v43 }
 0x287   : > { %v717_v53 = vpop.permute.xlu1 %716 }
 0x2f3   : > { %v691_v45 = vpop.xlane.xlu0 %690 }
 0x2f4   : > { %1184 = vrcp.f32 %v691_v45 }
 0x2fa   : > { %v1185_v49 = vpop.eup %1184 }
 0x2fb   : > { %v693_v52 = vmul.f32 %v1185_v49, %v1183_v43 }
 0x2fd   : > { %694 = vst [vmem:[%s1850_s12 + $0x10] sm:$0xff] %v693_v52  ;;  %v719_v54 = vmul.f32 %v717_v53, %v693_v52 }
 0x2ff   : > { %720 = vst [vmem:[%s1850_s12 + $0x18] sm:$0xff] %v719_v54  ;;  %v737_v55 = vmul.f32 %v1177_v51, %v719_v54 }
 0x301   : > { %v738_v58 = vmul.f32 %v737_v55, %v602_v17 }
 0x303   : > { %v739_v59 = vmul.f32 %v1003_v57, %v738_v58 }
 0x305   : > { %v740_v60 = vrot.slane %v739_v59, 4 }
 0x307   : > { %v741_v61 = vadd.f32 %v740_v60, %v739_v59 }
 0x309   : > { %v742_v62 = vrot.slane %v741_v61, 2 }
 0x30b   : > { %v743_v63 = vadd.f32 %v742_v62, %v741_v61 }
 0x30d   : > { %v744_v0 = vrot.slane %v743_v63, 1 }
 0x30f   : > { %v745_v2 = vadd.f32 %v744_v0, %v743_v63  ;;  %751 = sbr.rel (%p1004_p1) target bundleno = 863 (0x35f), region = 84 }
 0x311   : > { %v746_v3 = vadd.f32 %v745_v2, %v732_v1 }
 0x313   : > { %747 = vst [vmem:[%s1853_s13] sm:$0x1] %v746_v3 }
 0x314   : > { %s2058_s24 = smov (!%p752_p12, %s1868_s24), 1 }
 0x315   : > { %s754_s14 = scvt.s32.f32 %s2058_s24 }
 0x317   : > { %v755_v4 = vstv %s754_s14 }
 0x318   : > { %1186 = vrcp.f32 %v755_v4  ;;  %v767_v7 = vand.u32 2147483648, %v755_v4  ;;  %vm761_vm6 = vweird.f32 %v755_v4  ;;  %v765_v9 = vand.u32 2147483647, %v755_v4 }
 0x31a   : > { %v768_v11 = vor.u32 1.1754944e-38, %v767_v7  ;;  %vm766_vm9 = vcmp.eq.f32.partialorder %v765_v9, 8.507059e+37  ;;  %v771_v15 = vld [vmem:[%s1853_s13] sm:$0x1] }
 0x31e   : > { %v1187_v5 = vpop.eup %1186 }
 0x31f   : > { %v757_v6 = vmul.f32 %v1187_v5, %v755_v4  ;;  %vm762_vm7 = vweird.f32 %v1187_v5 }
 0x320   : > { %vm763_vm8 = vmor %vm761_vm6, %vm762_vm7 }
 0x321   : > { %v758_v8 = vsub.f32 1.0, %v757_v6 }
 0x323   : > { %v759_v10 = vmul.f32 %v1187_v5, %v758_v8 }
 0x325   : > { %v760_v12 = vadd.f32 %v1187_v5, %v759_v10 }
 0x327   : > { %v764_v13 = vsel %vm763_vm8, %v1187_v5, %v760_v12 }
 0x328   : > { %v769_v14 = vsel %vm766_vm9, %v768_v11, %v764_v13 }
 0x329   : > { %1009 = vpush %v769_v14 }
 0x35a   : > { %s1010_s30 = spop %1009 }
 0x35b   : > { %v772_v16 = vstv %s1010_s30 }
 0x35c   : > { %v773_v17 = vmul.f32 %v772_v16, %v771_v15 }
 0x35e   : > { %774 = vst [vmem:[%s1853_s13] sm:$0x1] %v773_v17 }
 0x35f PF: > { %s2032_s16 = sld [smem:[#allocation28_spill]]  ;;  %s1011_s27 = smul.u32 5, %s1536_s22 }
 0x360   : > { %s795_s3 = sshll.u32 %s1850_s12, 4  ;;  %s2033_s24 = sld [smem:[#allocation46_spill]]  ;;  %s796_s3 = int_to_ptr.vmem [resolvable:$true] %s795_s3 }
 0x361   : > { %s808_s1 = sshll.u32 %s1853_s13, 4  ;;  %s2035_s25 = sld [smem:[#allocation45_spill]]  ;;  %s1894_s1 = int_to_ptr.vmem [resolvable:$true] %s808_s1 }
 0x362   : > { %s776_s22 = scalar_lea.sflag [#allocation6], %s1818_s10 }
 0x365   : > { %s1012_s28 = smul.u32 10, %s2032_s16 }
 0x366   : > { %s2034_s11 = smov %s2033_s24  ;;  %s806_s14 = scalar_lea.hbm %s2033_s24, %s2032_s16 }
 0x367   : > { %s791_s5 = sadd.s32 %s1012_s28, %s1011_s27  ;;  %s2036_s4 = smov %s2035_s25 }
 0x368   : > { %s1005_s30 = sshll.u32 %s791_s5, 3  ;;  %s1896_s23 = sshll.u32 %s806_s14, 4  ;;  %s811_s23 = int_to_ptr.hbm [resolvable:$true] %s1896_s23 }
 0x369   : > { %s793_s21 = scalar_lea.hbm %s2035_s25, %s1005_s30  ;;  %s1400_s2 = scalar_lea.hbm %s2036_s4, 160 }
 0x36a   : > { %s797_s20 = sshll.u32 %s793_s21, 4  ;;  %s798_s20 = int_to_ptr.hbm [resolvable:$true] %s797_s20 }
 0x36b   : > { %s1394_s12 = sshra.s32 %s798_s20, 4  ;;  %s1395_s12 = int_to_ptr.hbm [resolvable:$true] %s1394_s12 }
 0x36c   : > { %s1396_s27 = scalar_lea.hbm %s1395_s12, 40  ;;  %p1401_p10 = scmp.lt.s32.totalorder %s1395_s12, %s2036_s4 }
 0x36d   : > { %p1397_p13 = scmp.ne.s32.totalorder %s1395_s12, %s1396_s27  ;;  %p1402_p5 = scmp.lt.s32.totalorder %s1400_s2, %s1396_s27 }
 0x36f   : > { %p1398_p2 = pnand %p1397_p13, %p1748_p0  ;;  %p1403_p11 = por %p1402_p5, %p1401_p10 }
 0x371   : > { %p1399_p6 = pneg %p1398_p2 }
 0x373   : > { %p1404_p8 = pnand %p1403_p11, %p1399_p6 }
 0x375   : > { %1407 = shalt.err (!%p1404_p8)
}
 0x376   : > { %1033 = dma.vmem_to_hbm [thread:$0]  (%p1748_p0), %s796_s3, 640, %s798_s20, %s776_s22  }
 0x377   : > { %s781_s21 = scalar_lea.sflag [#allocation17], %s1830_s8  ;;  %s1422_s10 = sshra.s32 %s811_s23, 4  ;;  %s1423_s10 = int_to_ptr.hbm [resolvable:$true] %s1422_s10 }
 0x378   : > { %s1424_s28 = scalar_lea.hbm %s1423_s10, 1  ;;  %s1428_s7 = scalar_lea.hbm %s2034_s11, 2 }
 0x379   : > { %p1425_p4 = scmp.ne.s32.totalorder %s1423_s10, %s1424_s28  ;;  %p1429_p12 = scmp.lt.s32.totalorder %s1423_s10, %s2034_s11 }
 0x37a   : > { %p1430_p13 = scmp.lt.s32.totalorder %s1428_s7, %s1424_s28 }
 0x37b   : > { %p1426_p3 = pnand %p1425_p4, %p1799_p7 }
 0x37c   : > { %p1431_p2 = por %p1430_p13, %p1429_p12 }
 0x37d   : > { %p1427_p1 = pneg %p1426_p3 }
 0x37f   : > { %p1432_p0 = pnand %p1431_p2, %p1427_p1 }
 0x381   : > { %1435 = shalt.err (!%p1432_p0)
}
 0x382   : > { %1034 = dma.vmem_to_hbm [thread:$0]  (%p1799_p7), %s1894_s1, 16, %s811_s23, %s781_s21  }
 0x383 PF: > { %s2037_s20 = sld [smem:[#allocation33_spill]]  ;;  %p1073_p6 = scmp.ge.s32.totalorder %s1552_s26, 2 }
 0x384   : > { %s822_s9 = sand.u32 1, %s1524_s19  }
 0x385   : > { %s823_s8 = scalar_lea.sflag [#allocation6], %s822_s9 }
 0x389   : > { %p2038_p10 = scmp.ne.s32.totalorder %s2037_s20, 0 }
 0x38b   : > { %p1058_p5 = pnand %p1073_p6, %p2038_p10 }
 0x38d   : > { %p1059_p11 = pneg %p1058_p5 }
 0x38f   : > { %1503 = dma.done.wait (%p1059_p11), %s823_s8, 640  }
 0x390   : > { %1505 = vsyncadd (%p1059_p11), %s823_s8, 4294966656  ;;  %s832_s30 = sand.u32 1, %s1512_s17   ;;  %p1061_p8 = pnand %p1073_p6, %p1805_p9 }
 0x391   : > { %s833_s15 = scalar_lea.sflag [#allocation17], %s832_s30 }
 0x392   : > { %p1062_p4 = pneg %p1061_p8 }
 0x394   : > { %1507 = dma.done.wait (%p1062_p4), %s833_s15, 16  }
 0x395   : > { %1509 = vsyncadd (%p1062_p4), %s833_s15, 4294967280  ;;  %s43_s26 = sadd.s32 1, %s1552_s26   ;;  %s2040_s1 = sld [smem:[#allocation35_spill]] }
 0x396   : > { %p40_p7 = scmp.ge.s32.totalorder %s43_s26, 6   ;;  %s2041_s19 = sld [smem:[#allocation26_spill]] }
 0x397   : > { %s2042_s20 = sld [smem:[#allocation27_spill]]  ;;  %s2048_s17 = smov %s1516_s18 }
 0x398   : > { %s2043_s21 = sld [smem:[#allocation34_spill]]  ;;  %s2049_s18 = smov %s1520_s0 }
 0x399   : > { %s2044_s22 = sld [smem:[#allocation29_spill]]  ;;  %42 = sbr.rel (!%p40_p7) target bundleno = 30 (0x1e), region = 151 }
 0x39a   : > { %s2045_s23 = sld [smem:[#allocation30_spill]] }
 0x39b   : > { %s2046_s24 = sld [smem:[#allocation31_spill]]  ;;  %s2050_s0 = smov %s2040_s1 }
 0x39c   : > { %s2047_s25 = sld [smem:[#allocation32_spill]] }
 0x39e   :  { %838 = vsyncpa [#allocation5], 1 }
 0x39f   :  { %840 = vsyncpa [#allocation5 + $0x1], 1 }
 0x3a0   :  { %841 = vsyncpa [#allocation8], 1 }
 0x3a1   :  { %843 = vsyncpa [#allocation8 + $0x1], 1 }
 0x3a2   :  { %844 = vsyncpa [#allocation11], 1 }
 0x3a3   :  { %845 = vsyncpa [#allocation14], 1 }
 0x3a4   :  { %846 = vsyncpa [#allocation6], 1 }
 0x3a5   :  { %848 = vsyncpa [#allocation6 + $0x1], 1 }
 0x3a6   :  { %849 = vsyncpa [#allocation17], 1 }
 0x3a7   :  { %851 = vsyncpa [#allocation17 + $0x1], 1 }

</bundles_post_ra>
